<compile_context>
chip_gen: v7x
topology: tpu7x:2x2x1
jax: 0.10.0
libtpu: 0.0.40
codegen_flags: <defaults>
</compile_context>

<pallas_src>
import jax
import jax.numpy as jnp
from jax.experimental import pallas as pl
from jax.experimental.pallas import tpu as pltpu


# ----------------------------- Pallas kernel ----------------------------------

def fused_adapter_kernel(x_ref, w1_ref, b1_ref, w2_ref, b2_ref,
                         w3_ref, b3_ref, wl_ref, bl_ref, o_ref):
    # x_ref : (TB, 512)              activations, compute dtype (f32 or bf16)
    # w*_ref: (Cin, Cout)            centre-tap conv weights, compute dtype
    # wl_ref: (512, 768)             bottleneck weight (transposed), compute dtype
    # b*_ref: (1, Cout) f32          biases (bias + ReLU done in f32)
    # o_ref : (TB, 768) f32          output
    cdt = w1_ref.dtype
    h = jnp.dot(x_ref[...], w1_ref[...], preferred_element_type=jnp.float32)
    h = jnp.maximum(h + b1_ref[...], 0.0).astype(cdt)          # conv1 (centre tap) + ReLU
    h = jnp.dot(h, w2_ref[...], preferred_element_type=jnp.float32)
    h = jnp.maximum(h + b2_ref[...], 0.0).astype(cdt)          # conv2 (centre tap) + ReLU
    h = jnp.dot(h, w3_ref[...], preferred_element_type=jnp.float32)
    h = jnp.maximum(h + b3_ref[...], 0.0).astype(cdt)          # conv3 (centre tap) + ReLU
    o = jnp.dot(h, wl_ref[...], preferred_element_type=jnp.float32) + bl_ref[...]
    o_ref[...] = o.astype(o_ref.dtype)                          # bottleneck Linear


# ------------------------------ wrapper ----------------------------------------

def modality_adapter_forward(x_ncl, params, *, compute_dtype=jnp.float32,
                             batch_tile=256):
    """x_ncl: (B, 512, 1) in PyTorch NCL layout.  Returns (B, 768) f32."""
    B, C, L = x_ncl.shape
    assert C == 512 and L == 1, (
        "x.view(B, -1) -> Linear(512, 768) requires input of shape (B, 512, 1)")
    # (B, 512, 1) -> (B, 512): pure reshape, no transpose needed at L == 1.
    x = x_ncl.reshape(B, C).astype(compute_dtype)

    k_mid = params["w1"].shape[-1] // 2                      # centre tap (k = 2)
    w1 = params["w1"][:, :, k_mid].T.astype(compute_dtype)   # (512, 256)
    w2 = params["w2"][:, :, k_mid].T.astype(compute_dtype)   # (256, 128)
    w3 = params["w3"][:, :, k_mid].T.astype(compute_dtype)   # (128, 512)
    wl = params["wl"].T.astype(compute_dtype)                 # (512, 768)
    b1 = params["b1"].reshape(1, -1).astype(jnp.float32)
    b2 = params["b2"].reshape(1, -1).astype(jnp.float32)
    b3 = params["b3"].reshape(1, -1).astype(jnp.float32)
    bl = params["bl"].reshape(1, -1).astype(jnp.float32)

    # Sublane packing of the activation dtype (8 for f32, 16 for bf16): pad the batch
    # so every vld/vst is dense (no masked partial stores) and the (8,128) block rule
    # is satisfied without relying on the "equals full array dims" escape hatch.
    sub = max(8, 32 // jnp.dtype(compute_dtype).itemsize)

    if B <= batch_tile:
        bp = pl.cdiv(B, sub) * sub
        tb = bp
    else:
        tb = batch_tile                                       # multiple of 8 and 16
        bp = pl.cdiv(B, tb) * tb
    if bp != B:
        x = jnp.pad(x, ((0, bp - B), (0, 0)))

    dims = ((512, 256), (256, 128), (128, 512), (512, 768))
    flops = 2 * bp * sum(ci * co for ci, co in dims)
    bytes_accessed = (x.size * x.dtype.itemsize
                      + sum(a.size * a.dtype.itemsize
                            for a in (w1, w2, w3, wl, b1, b2, b3, bl))
                      + bp * 768 * 4)

    full = lambda i: (0, 0)
    out = pl.pallas_call(
        fused_adapter_kernel,
        out_shape=jax.ShapeDtypeStruct((bp, 768), jnp.float32),
        grid=(bp // tb,),
        in_specs=[
            pl.BlockSpec((tb, 512), lambda i: (i, 0)),     # activations, batch-tiled
            pl.BlockSpec((512, 256), full), pl.BlockSpec((1, 256), full),
            pl.BlockSpec((256, 128), full), pl.BlockSpec((1, 128), full),
            pl.BlockSpec((128, 512), full), pl.BlockSpec((1, 512), full),
            pl.BlockSpec((512, 768), full), pl.BlockSpec((1, 768), full),
        ],
        out_specs=pl.BlockSpec((tb, 768), lambda i: (i, 0)),   # lane-dense (768 = 6*128)
        compiler_params=pltpu.CompilerParams(
            dimension_semantics=("parallel",)),                # batch tiles -> both TCs on v7x
        cost_estimate=pl.CostEstimate(flops=flops, transcendentals=0,
                                      bytes_accessed=bytes_accessed),
    )(x, w1, b1, w2, b2, w3, b3, wl, bl)
    return out[:B] if bp != B else out


# ------------------------------ params / reference -----------------------------

def init_params(key):
    ks = jax.random.split(key, 8)
    def w(k, shape, fan_in):
        return jax.random.normal(k, shape, jnp.float32) / jnp.sqrt(fan_in)
    return {
        # conv weights in PyTorch layout (Cout, Cin, K); biases (Cout,)
        "w1": w(ks[0], (256, 512, 5), 5 * 512), "b1": w(ks[1], (256,), 5 * 512),
        "w2": w(ks[2], (128, 256, 5), 5 * 256), "b2": w(ks[3], (128,), 5 * 256),
        "w3": w(ks[4], (512, 128, 5), 5 * 128), "b3": w(ks[5], (512,), 5 * 128),
        # linear weight in PyTorch layout (768, 512); bias (768,)
        "wl": w(ks[6], (768, 512), 512),        "bl": w(ks[7], (768,), 512),
    }


def reference_forward(x_ncl, params):
    # Full 5-tap conv reference (pure XLA), PyTorch-equivalent semantics.
    def conv(x, w_oik, b):
        y = jax.lax.conv_general_dilated(
            x, w_oik, window_strides=(1,), padding=[(2, 2)],
            dimension_numbers=("NCH", "OIH", "NCH"))
        return jnp.maximum(y + b[None, :, None], 0.0)
    h = conv(x_ncl, params["w1"], params["b1"])
    h = conv(h, params["w2"], params["b2"])
    h = conv(h, params["w3"], params["b3"])
    h = h.reshape(h.shape[0], -1)
    return h @ params["wl"].T + params["bl"][None, :]


if __name__ == "__main__":
    key = jax.random.PRNGKey(0)
    pkey, xkey = jax.random.split(key)
    params = init_params(pkey)

    B, C, L = 2, 512, 1   # the module's flatten -> Linear(512, 768) implies L == 1
    x = jax.random.normal(xkey, (B, C, L), jnp.float32)

    ref = reference_forward(x, params)

    # f32 path (exact-ish vs reference).
    out = jax.block_until_ready(modality_adapter_forward(x, params))
    assert out.shape == (B, 768), out.shape
    assert jnp.allclose(out, ref, atol=1e-4, rtol=1e-4), \
        float(jnp.max(jnp.abs(out - ref)))

    # bf16-operand path (f32 accumulation) -- the MXU fast path on v6e/v7x.
    out_bf16 = jax.block_until_ready(
        modality_adapter_forward(x, params, compute_dtype=jnp.bfloat16))
    assert out_bf16.shape == (B, 768)
    assert float(jnp.max(jnp.abs(out_bf16 - ref))) < 1e-1

    print("KERNEL_OK")
</pallas_src>

<mosaic_0001>
module attributes {stable_mosaic.version = 11 : i64} {
  func.func @fused_adapter_kernel(%arg0: i32, %arg1: memref<8x512xf32, #tpu.memory_space<vmem>>, %arg2: memref<512x256xf32, #tpu.memory_space<vmem>>, %arg3: memref<1x256xf32, #tpu.memory_space<vmem>>, %arg4: memref<256x128xf32, #tpu.memory_space<vmem>>, %arg5: memref<1x128xf32, #tpu.memory_space<vmem>>, %arg6: memref<128x512xf32, #tpu.memory_space<vmem>>, %arg7: memref<1x512xf32, #tpu.memory_space<vmem>>, %arg8: memref<512x768xf32, #tpu.memory_space<vmem>>, %arg9: memref<1x768xf32, #tpu.memory_space<vmem>>, %arg10: memref<8x768xf32, #tpu.memory_space<vmem>>) attributes {dimension_semantics = [#tpu.dimension_semantics<parallel>], iteration_bounds = array<i64: 1>, scalar_prefetch = 0 : i64, scratch_operands = 0 : i64, tpu.core_type = #tpu.core_type<tc>, window_params = [{transform_indices = @transform_0, window_bounds = array<i64: 8, 512>}, {pipeline_mode = #tpu.pipeline_mode<synchronous>, transform_indices = @transform_1, window_bounds = array<i64: 512, 256>}, {pipeline_mode = #tpu.pipeline_mode<synchronous>, transform_indices = @transform_2, window_bounds = array<i64: 1, 256>}, {pipeline_mode = #tpu.pipeline_mode<synchronous>, transform_indices = @transform_3, window_bounds = array<i64: 256, 128>}, {pipeline_mode = #tpu.pipeline_mode<synchronous>, transform_indices = @transform_4, window_bounds = array<i64: 1, 128>}, {pipeline_mode = #tpu.pipeline_mode<synchronous>, transform_indices = @transform_5, window_bounds = array<i64: 128, 512>}, {pipeline_mode = #tpu.pipeline_mode<synchronous>, transform_indices = @transform_6, window_bounds = array<i64: 1, 512>}, {pipeline_mode = #tpu.pipeline_mode<synchronous>, transform_indices = @transform_7, window_bounds = array<i64: 512, 768>}, {pipeline_mode = #tpu.pipeline_mode<synchronous>, transform_indices = @transform_8, window_bounds = array<i64: 1, 768>}, {transform_indices = @transform_9, window_bounds = array<i64: 8, 768>}]} {
    %c0 = arith.constant 0 : index
    %c0_0 = arith.constant 0 : index
    %0 = vector.load %arg1[%c0, %c0_0] : memref<8x512xf32, #tpu.memory_space<vmem>>, vector<8x512xf32>
    %c0_1 = arith.constant 0 : index
    %c0_2 = arith.constant 0 : index
    %1 = vector.load %arg2[%c0_1, %c0_2] : memref<512x256xf32, #tpu.memory_space<vmem>>, vector<512x256xf32>
    %cst = arith.constant dense<0.000000e+00> : vector<8x256xf32>
    %2 = tpu.matmul %0, %1, %cst {dimension_numbers = #tpu.dot_dimension_numbers<[1], [0], [0], [1], [0, 0, 1, 1], [], []>} : vector<8x512xf32>, vector<512x256xf32>, vector<8x256xf32> -> vector<8x256xf32>
    %c0_3 = arith.constant 0 : index
    %c0_4 = arith.constant 0 : index
    %3 = vector.load %arg3[%c0_3, %c0_4] : memref<1x256xf32, #tpu.memory_space<vmem>>, vector<1x256xf32>
    %4 = vector.broadcast %3 : vector<1x256xf32> to vector<8x256xf32>
    %5 = arith.addf %2, %4 : vector<8x256xf32>
    %cst_5 = arith.constant 0.000000e+00 : f32
    %6 = vector.broadcast %cst_5 : f32 to vector<8x256xf32>
    %7 = arith.maximumf %5, %6 : vector<8x256xf32>
    %c0_6 = arith.constant 0 : index
    %c0_7 = arith.constant 0 : index
    %8 = vector.load %arg4[%c0_6, %c0_7] : memref<256x128xf32, #tpu.memory_space<vmem>>, vector<256x128xf32>
    %cst_8 = arith.constant dense<0.000000e+00> : vector<8x128xf32>
    %9 = tpu.matmul %7, %8, %cst_8 {dimension_numbers = #tpu.dot_dimension_numbers<[1], [0], [0], [1], [0, 0, 1, 1], [], []>} : vector<8x256xf32>, vector<256x128xf32>, vector<8x128xf32> -> vector<8x128xf32>
    %c0_9 = arith.constant 0 : index
    %c0_10 = arith.constant 0 : index
    %10 = vector.load %arg5[%c0_9, %c0_10] : memref<1x128xf32, #tpu.memory_space<vmem>>, vector<1x128xf32>
    %11 = vector.broadcast %10 : vector<1x128xf32> to vector<8x128xf32>
    %12 = arith.addf %9, %11 : vector<8x128xf32>
    %cst_11 = arith.constant 0.000000e+00 : f32
    %13 = vector.broadcast %cst_11 : f32 to vector<8x128xf32>
    %14 = arith.maximumf %12, %13 : vector<8x128xf32>
    %c0_12 = arith.constant 0 : index
    %c0_13 = arith.constant 0 : index
    %15 = vector.load %arg6[%c0_12, %c0_13] : memref<128x512xf32, #tpu.memory_space<vmem>>, vector<128x512xf32>
    %cst_14 = arith.constant dense<0.000000e+00> : vector<8x512xf32>
    %16 = tpu.matmul %14, %15, %cst_14 {dimension_numbers = #tpu.dot_dimension_numbers<[1], [0], [0], [1], [0, 0, 1, 1], [], []>} : vector<8x128xf32>, vector<128x512xf32>, vector<8x512xf32> -> vector<8x512xf32>
    %c0_15 = arith.constant 0 : index
    %c0_16 = arith.constant 0 : index
    %17 = vector.load %arg7[%c0_15, %c0_16] : memref<1x512xf32, #tpu.memory_space<vmem>>, vector<1x512xf32>
    %18 = vector.broadcast %17 : vector<1x512xf32> to vector<8x512xf32>
    %19 = arith.addf %16, %18 : vector<8x512xf32>
    %cst_17 = arith.constant 0.000000e+00 : f32
    %20 = vector.broadcast %cst_17 : f32 to vector<8x512xf32>
    %21 = arith.maximumf %19, %20 : vector<8x512xf32>
    %c0_18 = arith.constant 0 : index
    %c0_19 = arith.constant 0 : index
    %22 = vector.load %arg8[%c0_18, %c0_19] : memref<512x768xf32, #tpu.memory_space<vmem>>, vector<512x768xf32>
    %cst_20 = arith.constant dense<0.000000e+00> : vector<8x768xf32>
    %23 = tpu.matmul %21, %22, %cst_20 {dimension_numbers = #tpu.dot_dimension_numbers<[1], [0], [0], [1], [0, 0, 1, 1], [], []>} : vector<8x512xf32>, vector<512x768xf32>, vector<8x768xf32> -> vector<8x768xf32>
    %c0_21 = arith.constant 0 : index
    %c0_22 = arith.constant 0 : index
    %24 = vector.load %arg9[%c0_21, %c0_22] : memref<1x768xf32, #tpu.memory_space<vmem>>, vector<1x768xf32>
    %25 = vector.broadcast %24 : vector<1x768xf32> to vector<8x768xf32>
    %26 = arith.addf %23, %25 : vector<8x768xf32>
    %c0_23 = arith.constant 0 : index
    %c0_24 = arith.constant 0 : index
    %27 = vector.load %arg10[%c0_23, %c0_24] : memref<8x768xf32, #tpu.memory_space<vmem>>, vector<8x768xf32>
    tpu.vector_store %arg10[%c0_23, %c0_24], %26 {strides = array<i32>} : memref<8x768xf32, #tpu.memory_space<vmem>>, vector<8x768xf32>,
    return
  }
  func.func @transform_0(%arg0: i32) -> (i32, i32) {
    %c0_i32 = arith.constant 0 : i32
    %c0_i32_0 = arith.constant 0 : i32
    return %arg0, %c0_i32 : i32, i32
  }
  func.func @transform_1(%arg0: i32) -> (i32, i32) {
    %c0_i32 = arith.constant 0 : i32
    %c0_i32_0 = arith.constant 0 : i32
    %c0_i32_1 = arith.constant 0 : i32
    return %c0_i32, %c0_i32_0 : i32, i32
  }
  func.func @transform_2(%arg0: i32) -> (i32, i32) {
    %c0_i32 = arith.constant 0 : i32
    %c0_i32_0 = arith.constant 0 : i32
    %c0_i32_1 = arith.constant 0 : i32
    return %c0_i32, %c0_i32_0 : i32, i32
  }
  func.func @transform_3(%arg0: i32) -> (i32, i32) {
    %c0_i32 = arith.constant 0 : i32
    %c0_i32_0 = arith.constant 0 : i32
    %c0_i32_1 = arith.constant 0 : i32
    return %c0_i32, %c0_i32_0 : i32, i32
  }
  func.func @transform_4(%arg0: i32) -> (i32, i32) {
    %c0_i32 = arith.constant 0 : i32
    %c0_i32_0 = arith.constant 0 : i32
    %c0_i32_1 = arith.constant 0 : i32
    return %c0_i32, %c0_i32_0 : i32, i32
  }
  func.func @transform_5(%arg0: i32) -> (i32, i32) {
    %c0_i32 = arith.constant 0 : i32
    %c0_i32_0 = arith.constant 0 : i32
    %c0_i32_1 = arith.constant 0 : i32
    return %c0_i32, %c0_i32_0 : i32, i32
  }
  func.func @transform_6(%arg0: i32) -> (i32, i32) {
    %c0_i32 = arith.constant 0 : i32
    %c0_i32_0 = arith.constant 0 : i32
    %c0_i32_1 = arith.constant 0 : i32
    return %c0_i32, %c0_i32_0 : i32, i32
  }
  func.func @transform_7(%arg0: i32) -> (i32, i32) {
    %c0_i32 = arith.constant 0 : i32
    %c0_i32_0 = arith.constant 0 : i32
    %c0_i32_1 = arith.constant 0 : i32
    return %c0_i32, %c0_i32_0 : i32, i32
  }
  func.func @transform_8(%arg0: i32) -> (i32, i32) {
    %c0_i32 = arith.constant 0 : i32
    %c0_i32_0 = arith.constant 0 : i32
    %c0_i32_1 = arith.constant 0 : i32
    return %c0_i32, %c0_i32_0 : i32, i32
  }
  func.func @transform_9(%arg0: i32) -> (i32, i32) {
    %c0_i32 = arith.constant 0 : i32
    %c0_i32_0 = arith.constant 0 : i32
    return %arg0, %c0_i32 : i32, i32
  }
}

</mosaic_0001>

<bundles_post_ra>
// kernel: tpu_custom_call.1
= control target key start
LH: loop header
LB: loop body
LE: loop exit
PB: predicated region body
PF: predicated region fallthrough
CT: control target
= control target key end

     0   :  { %14 = vsyncpa [#allocation3], 0  ;;  %s2806_s0 = inlined_call_operand.hbm [shape: f32[8,512], index: 0, kind: input, shape index: {}]   ;;  %s2807_s1 = inlined_call_operand.hbm [shape: f32[512,256], index: 1, kind: input, shape index: {}]   ;;  %s2808_s2 = inlined_call_operand.hbm [shape: f32[1,256], index: 2, kind: input, shape index: {}]   ;;  %s2809_s3 = inlined_call_operand.hbm [shape: f32[256,128], index: 3, kind: input, shape index: {}]   ;;  %s2810_s4 = inlined_call_operand.hbm [shape: f32[1,128], index: 4, kind: input, shape index: {}]   ;;  %s2811_s5 = inlined_call_operand.hbm [shape: f32[128,512], index: 5, kind: input, shape index: {}]   ;;  %s2812_s6 = inlined_call_operand.hbm [shape: f32[1,512], index: 6, kind: input, shape index: {}]   ;;  %s2813_s7 = inlined_call_operand.hbm [shape: f32[512,768], index: 7, kind: input, shape index: {}]   ;;  %s2814_s8 = inlined_call_operand.hbm [shape: f32[1,768], index: 8, kind: input, shape index: {}]   ;;  %s2815_s9 = inlined_call_operand.hbm [shape: f32[8,768], index: 9, kind: output, shape index: {}]  }
   0x1   :  { %15 = vsyncpa [#allocation6], 0 }
   0x2   :  { %16 = vsyncpa [#allocation9], 0 }
   0x3   :  { %17 = vsyncpa [#allocation12], 0 }
   0x4   :  { %18 = vsyncpa [#allocation15], 0 }
   0x5   :  { %19 = vsyncpa [#allocation4], 0  ;;  %s2553_s30 = smov [#allocation5]   ;;  %s2321_s13 = scalar_lea.hbm %s2807_s1, 16384 }
   0x6   :  { %s35_s10 = sshll.u32 %s2553_s30, 4  ;;  %p2322_p0 = scmp.ne.s32.totalorder %s2807_s1, %s2321_s13  ;;  %s36_s10 = int_to_ptr.vmem [resolvable:$true] %s35_s10 }
   0x7   :  { %p2325_p1 = scmp.lt.u32.totalorder %s2321_s13, %s2807_s1 }
   0x9   :  { %p2327_p2 = pnand %p2325_p1, %p2322_p0 }
   0xb   :  { %2330 = shalt.err (!%p2327_p2)
}
   0xc   :  { %s2331_s18 = scalar_lea.vmem %s36_s10, 16384  ;;  %p2336_p4 = scmp.lt.s32.totalorder %s36_s10, %s36_s10 }
   0xd   :  { %p2332_p3 = scmp.ne.s32.totalorder %s36_s10, %s2331_s18  ;;  %p2337_p5 = scmp.lt.s32.totalorder %s2331_s18, %s2331_s18 }
   0xf   :  { %p2338_p6 = por %p2337_p5, %p2336_p4 }
  0x11   :  { %p2339_p7 = pnand %p2338_p6, %p2332_p3 }
  0x13   :  { %2342 = shalt.err (!%p2339_p7)
}
  0x14   :  { %s2554_s19 = smov 256   ;;  %s2555_s20 = smov 16  }
  0x15   :  { %41 = dma.hbm_to_vmem [thread:$0]  %s2807_s1, 16384, %s36_s10, [#allocation6], %s2554_s19, %s2554_s19, %s2555_s20  }
  0x16   :  { %s2556_s23 = smov [#allocation8]   ;;  %s2343_s27 = scalar_lea.hbm %s2809_s3, 4096 }
  0x17   :  { %s57_s24 = sshll.u32 %s2556_s23, 4  ;;  %p2344_p8 = scmp.ne.s32.totalorder %s2809_s3, %s2343_s27  ;;  %s58_s24 = int_to_ptr.vmem [resolvable:$true] %s57_s24 }
  0x18   :  { %p2347_p9 = scmp.lt.u32.totalorder %s2343_s27, %s2809_s3 }
  0x1a   :  { %p2349_p10 = pnand %p2347_p9, %p2344_p8 }
  0x1c   :  { %2352 = shalt.err (!%p2349_p10)
}
  0x1d   :  { %s2353_s12 = scalar_lea.vmem %s58_s24, 4096  ;;  %p2358_p12 = scmp.lt.s32.totalorder %s58_s24, %s58_s24 }
  0x1e   :  { %p2354_p11 = scmp.ne.s32.totalorder %s58_s24, %s2353_s12  ;;  %p2359_p13 = scmp.lt.s32.totalorder %s2353_s12, %s2353_s12 }
  0x20   :  { %p2360_p0 = por %p2359_p13, %p2358_p12 }
  0x22   :  { %p2361_p1 = pnand %p2360_p0, %p2354_p11 }
  0x24   :  { %2364 = shalt.err (!%p2361_p1)
}
  0x25   :  { %s2557_s1 = smov 128   ;;  %s2558_s10 = smov 8  }
  0x26   :  { %63 = dma.hbm_to_vmem [thread:$0]  %s2809_s3, 4096, %s58_s24, [#allocation9], %s2557_s1, %s2557_s1, %s2558_s10  }
  0x27   :  { %s2559_s15 = smov [#allocation11]   ;;  %s2365_s19 = scalar_lea.hbm %s2811_s5, 8192 }
  0x28   :  { %s79_s16 = sshll.u32 %s2559_s15, 4  ;;  %p2366_p2 = scmp.ne.s32.totalorder %s2811_s5, %s2365_s19  ;;  %s80_s16 = int_to_ptr.vmem [resolvable:$true] %s79_s16 }
  0x29   :  { %p2369_p3 = scmp.lt.u32.totalorder %s2365_s19, %s2811_s5 }
  0x2b   :  { %p2371_p4 = pnand %p2369_p3, %p2366_p2 }
  0x2d   :  { %2374 = shalt.err (!%p2371_p4)
}
  0x2e   :  { %s2375_s25 = scalar_lea.vmem %s80_s16, 8192  ;;  %p2380_p6 = scmp.lt.s32.totalorder %s80_s16, %s80_s16 }
  0x2f   :  { %p2376_p5 = scmp.ne.s32.totalorder %s80_s16, %s2375_s25  ;;  %p2381_p7 = scmp.lt.s32.totalorder %s2375_s25, %s2375_s25 }
  0x31   :  { %p2382_p8 = por %p2381_p7, %p2380_p6 }
  0x33   :  { %p2383_p9 = pnand %p2382_p8, %p2376_p5 }
  0x35   :  { %2386 = shalt.err (!%p2383_p9)
}
  0x36   :  { %s2560_s3 = smov 512   ;;  %s2561_s24 = smov 32  }
  0x37   :  { %85 = dma.hbm_to_vmem [thread:$0]  %s2811_s5, 8192, %s80_s16, [#allocation12], %s2560_s3, %s2560_s3, %s2561_s24  }
  0x38   :  { %s2562_s28 = smov [#allocation14]   ;;  %s2387_s12 = scalar_lea.hbm %s2813_s7, 49152 }
  0x39   :  { %s101_s29 = sshll.u32 %s2562_s28, 4  ;;  %p2388_p10 = scmp.ne.s32.totalorder %s2813_s7, %s2387_s12  ;;  %s102_s29 = int_to_ptr.vmem [resolvable:$true] %s101_s29 }
  0x3a   :  { %p2391_p11 = scmp.lt.u32.totalorder %s2387_s12, %s2813_s7 }
  0x3c   :  { %p2393_p12 = pnand %p2391_p11, %p2388_p10 }
  0x3e   :  { %2396 = shalt.err (!%p2393_p12)
}
  0x3f   :  { %s2397_s15 = scalar_lea.vmem %s102_s29, 49152  ;;  %p2402_p0 = scmp.lt.s32.totalorder %s102_s29, %s102_s29 }
  0x40   :  { %p2398_p13 = scmp.ne.s32.totalorder %s102_s29, %s2397_s15  ;;  %p2403_p1 = scmp.lt.s32.totalorder %s2397_s15, %s2397_s15 }
  0x42   :  { %p2404_p2 = por %p2403_p1, %p2402_p0 }
  0x44   :  { %p2405_p3 = pnand %p2404_p2, %p2398_p13 }
  0x46   :  { %2408 = shalt.err (!%p2405_p3)
}
  0x47   :  { %s2563_s5 = smov 768   ;;  %s2564_s16 = smov 48  }
  0x48   :  { %107 = dma.hbm_to_vmem [thread:$0]  %s2813_s7, 49152, %s102_s29, [#allocation15], %s2563_s5, %s2563_s5, %s2564_s16  }
  0x49   :  { %s2565_s19 = smov [#allocation2]   ;;  %s2566_s21 = smov [#allocation7]  }
  0x4a   :  { %s26_s20 = sshll.u32 %s2565_s19, 4  ;;  %s48_s22 = sshll.u32 %s2566_s21, 4  ;;  %s27_s20 = int_to_ptr.vmem [resolvable:$true] %s26_s20  ;;  %s49_s22 = int_to_ptr.vmem [resolvable:$true] %s48_s22 }
  0x4b   :  { %s2409_s3 = scalar_lea.hbm %s2806_s0, 512 }
  0x4c   :  { %p2410_p4 = scmp.ne.s32.totalorder %s2806_s0, %s2409_s3  ;;  %p2413_p5 = scmp.lt.u32.totalorder %s2409_s3, %s2806_s0 }
  0x4e   :  { %p2415_p6 = pnand %p2413_p5, %p2410_p4 }
  0x50   :  { %2418 = shalt.err (!%p2415_p6)
}
  0x51   :  { %s2419_s7 = scalar_lea.vmem %s27_s20, 512  ;;  %p2424_p8 = scmp.lt.s32.totalorder %s27_s20, %s27_s20 }
  0x52   :  { %p2420_p7 = scmp.ne.s32.totalorder %s27_s20, %s2419_s7  ;;  %p2425_p9 = scmp.lt.s32.totalorder %s2419_s7, %s2419_s7 }
  0x54   :  { %p2426_p10 = por %p2425_p9, %p2424_p8 }
  0x56   :  { %p2427_p11 = pnand %p2426_p10, %p2420_p7 }
  0x58   :  { %2430 = shalt.err (!%p2427_p11)
}
  0x59   :  { %29 = dma.hbm_to_vmem [thread:$0]  %s2806_s0, 512, %s27_s20, [#allocation3]  }
  0x5a   :  { %s2431_s1 = scalar_lea.hbm %s2808_s2, 32 }
  0x5b   :  { %p2432_p12 = scmp.ne.s32.totalorder %s2808_s2, %s2431_s1  ;;  %p2435_p13 = scmp.lt.u32.totalorder %s2431_s1, %s2808_s2 }
  0x5d   :  { %p2437_p0 = pnand %p2435_p13, %p2432_p12 }
  0x5f   :  { %2440 = shalt.err (!%p2437_p0)
}
  0x60   :  { %s2441_s5 = scalar_lea.vmem %s49_s22, 32  ;;  %p2446_p2 = scmp.lt.s32.totalorder %s49_s22, %s49_s22 }
  0x61   :  { %p2442_p1 = scmp.ne.s32.totalorder %s49_s22, %s2441_s5  ;;  %p2447_p3 = scmp.lt.s32.totalorder %s2441_s5, %s2441_s5 }
  0x63   :  { %p2448_p4 = por %p2447_p3, %p2446_p2 }
  0x65   :  { %p2449_p5 = pnand %p2448_p4, %p2442_p1 }
  0x67   :  { %2452 = shalt.err (!%p2449_p5)
}
  0x68   :  { %51 = dma.hbm_to_vmem [thread:$0]  %s2808_s2, 32, %s49_s22, [#allocation6]  }
  0x69   :  { %s2567_s17 = smov [#allocation10]   ;;  %s2568_s19 = smov [#allocation13]  }
  0x6a   :  { %s70_s18 = sshll.u32 %s2567_s17, 4  ;;  %s92_s20 = sshll.u32 %s2568_s19, 4  ;;  %s71_s18 = int_to_ptr.vmem [resolvable:$true] %s70_s18  ;;  %s93_s20 = int_to_ptr.vmem [resolvable:$true] %s92_s20 }
  0x6b   :  { %s2453_s25 = scalar_lea.hbm %s2810_s4, 16 }
  0x6c   :  { %p2454_p6 = scmp.ne.s32.totalorder %s2810_s4, %s2453_s25  ;;  %p2457_p7 = scmp.lt.u32.totalorder %s2453_s25, %s2810_s4 }
  0x6e   :  { %p2459_p8 = pnand %p2457_p7, %p2454_p6 }
  0x70   :  { %2462 = shalt.err (!%p2459_p8)
}
  0x71   :  { %s2463_s2 = scalar_lea.vmem %s71_s18, 16  ;;  %s2467_s22 = scalar_lea.vmem %s71_s18, 32 }
  0x72   :  { %p2464_p9 = scmp.ne.s32.totalorder %s71_s18, %s2463_s2  ;;  %p2468_p10 = scmp.lt.s32.totalorder %s71_s18, %s71_s18 }
  0x73   :  { %p2469_p11 = scmp.lt.s32.totalorder %s2467_s22, %s2463_s2 }
  0x75   :  { %p2470_p12 = por %p2469_p11, %p2468_p10 }
  0x77   :  { %p2471_p13 = pnand %p2470_p12, %p2464_p9 }
  0x79   :  { %2474 = shalt.err (!%p2471_p13)
}
  0x7a   :  { %73 = dma.hbm_to_vmem [thread:$0]  %s2810_s4, 16, %s71_s18, [#allocation9]  }
  0x7b   :  { %s2475_s11 = scalar_lea.hbm %s2812_s6, 64 }
  0x7c   :  { %p2476_p0 = scmp.ne.s32.totalorder %s2812_s6, %s2475_s11  ;;  %p2479_p1 = scmp.lt.u32.totalorder %s2475_s11, %s2812_s6 }
  0x7e   :  { %p2481_p2 = pnand %p2479_p1, %p2476_p0 }
  0x80   :  { %2484 = shalt.err (!%p2481_p2)
}
  0x81   :  { %s2485_s14 = scalar_lea.vmem %s93_s20, 64  ;;  %p2490_p4 = scmp.lt.s32.totalorder %s93_s20, %s93_s20 }
  0x82   :  { %p2486_p3 = scmp.ne.s32.totalorder %s93_s20, %s2485_s14  ;;  %p2491_p5 = scmp.lt.s32.totalorder %s2485_s14, %s2485_s14 }
  0x84   :  { %p2492_p6 = por %p2491_p5, %p2490_p4 }
  0x86   :  { %p2493_p7 = pnand %p2492_p6, %p2486_p3 }
  0x88   :  { %2496 = shalt.err (!%p2493_p7)
}
  0x89   :  { %95 = dma.hbm_to_vmem [thread:$0]  %s2812_s6, 64, %s93_s20, [#allocation12]  }
  0x8a   :  { %s2569_s5 = smov [#allocation16]   ;;  %s2497_s18 = scalar_lea.hbm %s2814_s8, 96 }
  0x8b   :  { %s114_s0 = sshll.u32 %s2569_s5, 4  ;;  %p2498_p8 = scmp.ne.s32.totalorder %s2814_s8, %s2497_s18  ;;  %s115_s0 = int_to_ptr.vmem [resolvable:$true] %s114_s0 }
  0x8c   :  { %p2501_p9 = scmp.lt.u32.totalorder %s2497_s18, %s2814_s8 }
  0x8e   :  { %p2503_p10 = pnand %p2501_p9, %p2498_p8 }
  0x90   :  { %2506 = shalt.err (!%p2503_p10)
}
  0x91   :  { %s2507_s3 = scalar_lea.vmem %s115_s0, 96  ;;  %p2512_p12 = scmp.lt.s32.totalorder %s115_s0, %s115_s0 }
  0x92   :  { %p2508_p11 = scmp.ne.s32.totalorder %s115_s0, %s2507_s3  ;;  %p2513_p13 = scmp.lt.s32.totalorder %s2507_s3, %s2507_s3 }
  0x94   :  { %p2514_p0 = por %p2513_p13, %p2512_p12 }
  0x96   :  { %p2515_p1 = pnand %p2514_p0, %p2508_p11 }
  0x98   :  { %2518 = shalt.err (!%p2515_p1)
}
  0x99   :  { %117 = dma.hbm_to_vmem [thread:$0]  %s2814_s8, 96, %s115_s0, [#allocation15]  }
  0x9a   :  { %2541 = dma.done.wait [#allocation3], 512  }
  0x9b   :  { %2542 = vsyncadd [#allocation3], 4294966784 }
  0x9c   :  { %2543 = dma.done.wait [#allocation6], 16416  }
  0x9d   :  { %2544 = vsyncadd [#allocation6], 4294950880 }
  0x9e   :  { %2545 = dma.done.wait [#allocation9], 4112  }
  0x9f   :  { %2546 = vsyncadd [#allocation9], 4294963184 }
  0xa0   :  { %2547 = dma.done.wait [#allocation12], 8256  }
  0xa1   :  { %2548 = vsyncadd [#allocation12], 4294959040 }
  0xa2   :  { %2549 = dma.done.wait [#allocation15], 49248  }
  0xa3   :  { %2550 = vsyncadd [#allocation15], 4294918048  ;;  %v150_v0 = vld [vmem:[#allocation5 + $0x8] sm:$0xff]  ;;  %v152_v1 = vld [vmem:[#allocation5 + $0x18] sm:$0xff]  ;;  %s2571_s8 = smov [#allocation17]  }
  0xa4   :  { %v149_v2 = vld [vmem:[#allocation5] sm:$0xff]  ;;  %v1678_v3 = vpack.c.bf16 %v152_v1, %v150_v0  ;;  %v151_v4 = vld [vmem:[#allocation5 + $0x10] sm:$0xff]  ;;  %v154_v5 = vld [vmem:[#allocation5 + $0x28] sm:$0xff]  ;;  %s1629_s24 = sshll.u32 %s2571_s8, 4  ;;  %s1630_s24 = int_to_ptr.vmem [resolvable:$true] %s1629_s24 }
  0xa5   :  { %v156_v6 = vld [vmem:[#allocation5 + $0x38] sm:$0xff]  ;;  %v1680_v7 = vpack.c.bf16 %v151_v4, %v149_v2  ;;  %v153_v9 = vld [vmem:[#allocation5 + $0x20] sm:$0xff]  ;;  %v155_v10 = vld [vmem:[#allocation5 + $0x30] sm:$0xff]  ;;  %s2519_s26 = scalar_lea.vmem %s1630_s24, 768  ;;  %p2524_p3 = scmp.lt.s32.totalorder %s1630_s24, %s1630_s24 }
  0xa6   :  { %v1682_v8 = vpack.c.bf16 %v156_v6, %v154_v5  ;;  %v158_v11 = vld [vmem:[#allocation5 + $0x48] sm:$0xff]  ;;  %1679 = vmatprep.subr.bf16.mxu0 %v1678_v3  ;;  %v160_v12 = vld [vmem:[#allocation5 + $0x58] sm:$0xff]  ;;  %v1684_v13 = vpack.c.bf16 %v155_v10, %v153_v9  ;;  %v157_v15 = vld [vmem:[#allocation5 + $0x40] sm:$0xff]  ;;  %p2520_p2 = scmp.ne.s32.totalorder %s1630_s24, %s2519_s26  ;;  %p2525_p4 = scmp.lt.s32.totalorder %s2519_s26, %s2519_s26 }
  0xa7   :  { %1681 = vmatpush1.bf16.msra.mxu0 %v1680_v7  ;;  %v1686_v14 = vpack.c.bf16 %v160_v12, %v158_v11  ;;  %v159_v16 = vld [vmem:[#allocation5 + $0x50] sm:$0xff]  ;;  %v162_v17 = vld [vmem:[#allocation5 + $0x68] sm:$0xff]  ;;  %v164_v18 = vld [vmem:[#allocation5 + $0x78] sm:$0xff] }
  0xa8   :  { %1683 = vmatprep.subr.bf16.mxu0 %v1682_v8  ;;  %v1688_v19 = vpack.c.bf16 %v159_v16, %v157_v15  ;;  %v1690_v20 = vpack.c.bf16 %v164_v18, %v162_v17  ;;  %v161_v21 = vld [vmem:[#allocation5 + $0x60] sm:$0xff]  ;;  %v163_v22 = vld [vmem:[#allocation5 + $0x70] sm:$0xff]  ;;  %v166_v23 = vld [vmem:[#allocation5 + $0x88] sm:$0xff]  ;;  %p2526_p5 = por %p2525_p4, %p2524_p3 }
  0xa9   :  { %v168_v24 = vld [vmem:[#allocation5 + $0x98] sm:$0xff]  ;;  %v1692_v25 = vpack.c.bf16 %v163_v22, %v161_v21  ;;  %v165_v27 = vld [vmem:[#allocation5 + $0x80] sm:$0xff]  ;;  %v167_v28 = vld [vmem:[#allocation5 + $0x90] sm:$0xff] }
  0xaa   :  { %v1694_v26 = vpack.c.bf16 %v168_v24, %v166_v23  ;;  %v170_v29 = vld [vmem:[#allocation5 + $0xa8] sm:$0xff]  ;;  %v172_v30 = vld [vmem:[#allocation5 + $0xb8] sm:$0xff]  ;;  %v1696_v31 = vpack.c.bf16 %v167_v28, %v165_v27  ;;  %v169_v33 = vld [vmem:[#allocation5 + $0xa0] sm:$0xff]  ;;  %p2527_p6 = pnand %p2526_p5, %p2520_p2 }
  0xab   :  { %1685 = vmatpush1.bf16.msra.mxu0 %v1684_v13  ;;  %v1698_v32 = vpack.c.bf16 %v172_v30, %v170_v29  ;;  %v171_v34 = vld [vmem:[#allocation5 + $0xb0] sm:$0xff]  ;;  %v174_v35 = vld [vmem:[#allocation5 + $0xc8] sm:$0xff]  ;;  %v176_v36 = vld [vmem:[#allocation5 + $0xd8] sm:$0xff] }
  0xac   :  { %1687 = vmatprep.subr.bf16.mxu0 %v1686_v14  ;;  %v1700_v37 = vpack.c.bf16 %v171_v34, %v169_v33  ;;  %v1702_v38 = vpack.c.bf16 %v176_v36, %v174_v35  ;;  %v173_v39 = vld [vmem:[#allocation5 + $0xc0] sm:$0xff]  ;;  %v175_v40 = vld [vmem:[#allocation5 + $0xd0] sm:$0xff]  ;;  %v146_v41 = vld [vmem:[#allocation2 + $0x8] sm:$0xff] }
  0xad   :  { %v178_v42 = vld [vmem:[#allocation5 + $0xe8] sm:$0xff]  ;;  %v180_v43 = vld [vmem:[#allocation5 + $0xf8] sm:$0xff]  ;;  %353 = vmatprep.mubr.f32.mxu0 %v146_v41  ;;  %v1704_v44 = vpack.c.bf16 %v175_v40, %v173_v39  ;;  %v177_v46 = vld [vmem:[#allocation5 + $0xe0] sm:$0xff] }
  0xae   :  { %v1706_v45 = vpack.c.bf16 %v180_v43, %v178_v42  ;;  %v179_v47 = vld [vmem:[#allocation5 + $0xf0] sm:$0xff]  ;;  %v182_v48 = vld [vmem:[#allocation5 + $0x108] sm:$0xff]  ;;  %v184_v49 = vld [vmem:[#allocation5 + $0x118] sm:$0xff] }
  0xaf   :  { %1689 = vmatpush1.bf16.msra.mxu0 %v1688_v19  ;;  %v1708_v50 = vpack.c.bf16 %v179_v47, %v177_v46  ;;  %v1710_v51 = vpack.c.bf16 %v184_v49, %v182_v48  ;;  %v181_v52 = vld [vmem:[#allocation5 + $0x100] sm:$0xff]  ;;  %v183_v53 = vld [vmem:[#allocation5 + $0x110] sm:$0xff]  ;;  %v186_v54 = vld [vmem:[#allocation5 + $0x128] sm:$0xff] }
  0xb0   :  { %1691 = vmatprep.subr.bf16.mxu0 %v1690_v20  ;;  %v188_v55 = vld [vmem:[#allocation5 + $0x138] sm:$0xff]  ;;  %v1712_v56 = vpack.c.bf16 %v183_v53, %v181_v52  ;;  %v185_v58 = vld [vmem:[#allocation5 + $0x120] sm:$0xff]  ;;  %v187_v59 = vld [vmem:[#allocation5 + $0x130] sm:$0xff] }
  0xb1   :  { %v1714_v57 = vpack.c.bf16 %v188_v55, %v186_v54  ;;  %v190_v60 = vld [vmem:[#allocation5 + $0x148] sm:$0xff]  ;;  %v192_v61 = vld [vmem:[#allocation5 + $0x158] sm:$0xff]  ;;  %v1716_v62 = vpack.c.bf16 %v187_v59, %v185_v58  ;;  %v189_v0 = vld [vmem:[#allocation5 + $0x140] sm:$0xff] }
  0xb2   :  { %v1718_v63 = vpack.c.bf16 %v192_v61, %v190_v60  ;;  %v191_v1 = vld [vmem:[#allocation5 + $0x150] sm:$0xff]  ;;  %v194_v2 = vld [vmem:[#allocation5 + $0x168] sm:$0xff]  ;;  %v196_v3 = vld [vmem:[#allocation5 + $0x178] sm:$0xff] }
  0xb3   :  { %1693 = vmatpush1.bf16.msra.mxu0 %v1692_v25  ;;  %v1720_v4 = vpack.c.bf16 %v191_v1, %v189_v0  ;;  %v1722_v5 = vpack.c.bf16 %v196_v3, %v194_v2  ;;  %v193_v6 = vld [vmem:[#allocation5 + $0x160] sm:$0xff]  ;;  %v195_v7 = vld [vmem:[#allocation5 + $0x170] sm:$0xff]  ;;  %v198_v8 = vld [vmem:[#allocation5 + $0x188] sm:$0xff] }
  0xb4   :  { %1695 = vmatprep.subr.bf16.mxu0 %v1694_v26  ;;  %v200_v9 = vld [vmem:[#allocation5 + $0x198] sm:$0xff]  ;;  %v1724_v10 = vpack.c.bf16 %v195_v7, %v193_v6  ;;  %v197_v12 = vld [vmem:[#allocation5 + $0x180] sm:$0xff]  ;;  %v199_v13 = vld [vmem:[#allocation5 + $0x190] sm:$0xff] }
  0xb5   :  { %v1726_v11 = vpack.c.bf16 %v200_v9, %v198_v8  ;;  %v202_v14 = vld [vmem:[#allocation5 + $0x1a8] sm:$0xff]  ;;  %v204_v15 = vld [vmem:[#allocation5 + $0x1b8] sm:$0xff]  ;;  %v1728_v16 = vpack.c.bf16 %v199_v13, %v197_v12  ;;  %v201_v18 = vld [vmem:[#allocation5 + $0x1a0] sm:$0xff] }
  0xb6   :  { %v1730_v17 = vpack.c.bf16 %v204_v15, %v202_v14  ;;  %v203_v19 = vld [vmem:[#allocation5 + $0x1b0] sm:$0xff]  ;;  %v206_v20 = vld [vmem:[#allocation5 + $0x1c8] sm:$0xff]  ;;  %v208_v21 = vld [vmem:[#allocation5 + $0x1d8] sm:$0xff] }
  0xb7   :  { %1697 = vmatpush1.bf16.msra.mxu0 %v1696_v31  ;;  %v1732_v22 = vpack.c.bf16 %v203_v19, %v201_v18  ;;  %v1734_v23 = vpack.c.bf16 %v208_v21, %v206_v20  ;;  %v205_v24 = vld [vmem:[#allocation5 + $0x1c0] sm:$0xff]  ;;  %v207_v25 = vld [vmem:[#allocation5 + $0x1d0] sm:$0xff]  ;;  %v210_v26 = vld [vmem:[#allocation5 + $0x1e8] sm:$0xff] }
  0xb8   :  { %1699 = vmatprep.subr.bf16.mxu0 %v1698_v32  ;;  %v212_v27 = vld [vmem:[#allocation5 + $0x1f8] sm:$0xff]  ;;  %v1736_v28 = vpack.c.bf16 %v207_v25, %v205_v24  ;;  %v209_v30 = vld [vmem:[#allocation5 + $0x1e0] sm:$0xff]  ;;  %v211_v31 = vld [vmem:[#allocation5 + $0x1f0] sm:$0xff] }
  0xb9   :  { %v1738_v29 = vpack.c.bf16 %v212_v27, %v210_v26  ;;  %v214_v32 = vld [vmem:[#allocation5 + $0x208] sm:$0xff]  ;;  %v216_v33 = vld [vmem:[#allocation5 + $0x218] sm:$0xff]  ;;  %v1740_v34 = vpack.c.bf16 %v211_v31, %v209_v30  ;;  %v213_v36 = vld [vmem:[#allocation5 + $0x200] sm:$0xff] }
  0xba   :  { %v1742_v35 = vpack.c.bf16 %v216_v33, %v214_v32  ;;  %v220_v39 = vld [vmem:[#allocation5 + $0x238] sm:$0xff]  ;;  %v145_v40 = vld [vmem:[#allocation2] sm:$0xff]  ;;  %v222_v46 = vld [vmem:[#allocation5 + $0x248] sm:$0xff] }
  0xbb   :  { %1701 = vmatpush1.bf16.msra.mxu0 %v1700_v37  ;;  %v215_v37 = vld [vmem:[#allocation5 + $0x210] sm:$0xff]  ;;  %v217_v43 = vld [vmem:[#allocation5 + $0x220] sm:$0xff]  ;;  %v224_v47 = vld [vmem:[#allocation5 + $0x258] sm:$0xff] }
  0xbc   :  { %1703 = vmatprep.subr.bf16.mxu0 %v1702_v38  ;;  %v218_v38 = vld [vmem:[#allocation5 + $0x228] sm:$0xff]  ;;  %v1744_v41 = vpack.c.bf16 %v215_v37, %v213_v36  ;;  %v1750_v49 = vpack.c.bf16 %v224_v47, %v222_v46  ;;  %v228_v53 = vld [vmem:[#allocation5 + $0x278] sm:$0xff]  ;;  %v261_v46 = vld [vmem:[#allocation5 + $0x380] sm:$0xff] }
  0xbd   :  { %v1746_v42 = vpack.c.bf16 %v220_v39, %v218_v38  ;;  %v226_v52 = vld [vmem:[#allocation5 + $0x268] sm:$0xff]  ;;  %v232_v59 = vld [vmem:[#allocation5 + $0x298] sm:$0xff]  ;;  %v263_v47 = vld [vmem:[#allocation5 + $0x390] sm:$0xff] }
  0xbe   :  { %v1754_v55 = vpack.c.bf16 %v228_v53, %v226_v52  ;;  %v230_v58 = vld [vmem:[#allocation5 + $0x288] sm:$0xff]  ;;  %v236_v1 = vld [vmem:[#allocation5 + $0x2b8] sm:$0xff]  ;;  %v265_v52 = vld [vmem:[#allocation5 + $0x3a0] sm:$0xff] }
  0xbf   :  { %1705 = vmatpush1.bf16.msra.mxu0 %v1704_v44  ;;  %v219_v44 = vld [vmem:[#allocation5 + $0x230] sm:$0xff]  ;;  %v1758_v61 = vpack.c.bf16 %v232_v59, %v230_v58  ;;  %v234_v0 = vld [vmem:[#allocation5 + $0x2a8] sm:$0xff]  ;;  %v240_v7 = vld [vmem:[#allocation5 + $0x2d8] sm:$0xff] }
  0xc0   :  { %1707 = vmatprep.subr.bf16.mxu0 %v1706_v45  ;;  %v148_v45 = vld [vmem:[#allocation2 + $0x18] sm:$0xff]  ;;  %v1748_v48 = vpack.c.bf16 %v219_v44, %v217_v43  ;;  %v1762_v3 = vpack.c.bf16 %v236_v1, %v234_v0  ;;  %v238_v6 = vld [vmem:[#allocation5 + $0x2c8] sm:$0xff]  ;;  %v267_v53 = vld [vmem:[#allocation5 + $0x3b0] sm:$0xff] }
  0xc1   :  { %v1766_v9 = vpack.c.bf16 %v240_v7, %v238_v6  ;;  %v242_v12 = vld [vmem:[#allocation5 + $0x2e8] sm:$0xff]  ;;  %v244_v13 = vld [vmem:[#allocation5 + $0x2f8] sm:$0xff]  ;;  %v269_v58 = vld [vmem:[#allocation5 + $0x3c0] sm:$0xff] }
  0xc2   :  { %v1770_v15 = vpack.c.bf16 %v244_v13, %v242_v12  ;;  %v246_v18 = vld [vmem:[#allocation5 + $0x308] sm:$0xff]  ;;  %v248_v19 = vld [vmem:[#allocation5 + $0x318] sm:$0xff]  ;;  %v271_v59 = vld [vmem:[#allocation5 + $0x3d0] sm:$0xff] }
  0xc3   :  { %1709 = vmatpush1.bf16.msra.mxu0 %v1708_v50  ;;  %v221_v50 = vld [vmem:[#allocation5 + $0x240] sm:$0xff]  ;;  %v1774_v21 = vpack.c.bf16 %v248_v19, %v246_v18  ;;  %v250_v24 = vld [vmem:[#allocation5 + $0x328] sm:$0xff]  ;;  %v252_v25 = vld [vmem:[#allocation5 + $0x338] sm:$0xff] }
  0xc4   :  { %1711 = vmatprep.subr.bf16.mxu0 %v1710_v51  ;;  %v223_v51 = vld [vmem:[#allocation5 + $0x250] sm:$0xff]  ;;  %v1778_v27 = vpack.c.bf16 %v252_v25, %v250_v24  ;;  %v254_v30 = vld [vmem:[#allocation5 + $0x348] sm:$0xff]  ;;  %v256_v31 = vld [vmem:[#allocation5 + $0x358] sm:$0xff] }
  0xc5   :  { %v1752_v54 = vpack.c.bf16 %v223_v51, %v221_v50  ;;  %v1782_v33 = vpack.c.bf16 %v256_v31, %v254_v30  ;;  %v258_v36 = vld [vmem:[#allocation5 + $0x368] sm:$0xff]  ;;  %v260_v37 = vld [vmem:[#allocation5 + $0x378] sm:$0xff]  ;;  %v1792_v50 = vpack.c.bf16 %v263_v47, %v261_v46  ;;  %v273_v0 = vld [vmem:[#allocation5 + $0x3e0] sm:$0xff] }
  0xc6   :  { %v1786_v39 = vpack.c.bf16 %v260_v37, %v258_v36  ;;  %v264_v43 = vld [vmem:[#allocation5 + $0x398] sm:$0xff]  ;;  %v275_v1 = vld [vmem:[#allocation5 + $0x3f0] sm:$0xff]  ;;  %v433_v6 = vld [vmem:[#allocation8] sm:$0xff] }
  0xc7   :  { %1713 = vmatpush1.bf16.msra.mxu0 %v1712_v56  ;;  %v225_v56 = vld [vmem:[#allocation5 + $0x260] sm:$0xff]  ;;  %v434_v7 = vld [vmem:[#allocation8 + $0x8] sm:$0xff]  ;;  %v435_v13 = vld [vmem:[#allocation8 + $0x10] sm:$0xff] }
  0xc8   :  { %1715 = vmatprep.subr.bf16.mxu0 %v1714_v57  ;;  %v227_v57 = vld [vmem:[#allocation5 + $0x270] sm:$0xff]  ;;  %v437_v19 = vld [vmem:[#allocation8 + $0x20] sm:$0xff]  ;;  %v464_v47 = vld [vmem:[#allocation8 + $0xf8] sm:$0xff] }
  0xc9   :  { %v1756_v60 = vpack.c.bf16 %v227_v57, %v225_v56  ;;  %v1796_v56 = vpack.c.bf16 %v267_v53, %v265_v52  ;;  %v439_v25 = vld [vmem:[#allocation8 + $0x30] sm:$0xff]  ;;  %v441_v31 = vld [vmem:[#allocation8 + $0x40] sm:$0xff] }
  0xca   :  { %v443_v37 = vld [vmem:[#allocation8 + $0x50] sm:$0xff] }
  0xcb   :  { %1717 = vmatpush1.bf16.msra.mxu0 %v1716_v62  ;;  %v229_v62 = vld [vmem:[#allocation5 + $0x280] sm:$0xff]  ;;  %v463_v46 = vld [vmem:[#allocation8 + $0xf0] sm:$0xff] }
  0xcc   :  { %1719 = vmatprep.subr.bf16.mxu0 %v1718_v63  ;;  %v231_v63 = vld [vmem:[#allocation5 + $0x290] sm:$0xff] }
  0xcd   :  { %v1760_v2 = vpack.c.bf16 %v231_v63, %v229_v62  ;;  %v1800_v62 = vpack.c.bf16 %v271_v59, %v269_v58  ;;  %v544_v52 = vld [vmem:[#allocation11 + $0x8] sm:$0xff] }
  0xce   :  { %v548_v53 = vld [vmem:[#allocation11 + $0x28] sm:$0xff] }
  0xcf   :  { %1721 = vmatpush1.bf16.msra.mxu0 %v1720_v4  ;;  %v233_v4 = vld [vmem:[#allocation5 + $0x2a0] sm:$0xff]  ;;  %v556_v58 = vld [vmem:[#allocation11 + $0x68] sm:$0xff] }
  0xd0   :  { %1723 = vmatprep.subr.bf16.mxu0 %v1722_v5  ;;  %v235_v5 = vld [vmem:[#allocation5 + $0x2b0] sm:$0xff] }
  0xd1   :  { %v1764_v8 = vpack.c.bf16 %v235_v5, %v233_v4  ;;  %v1804_v4 = vpack.c.bf16 %v275_v1, %v273_v0  ;;  %v564_v0 = vld [vmem:[#allocation11 + $0xa8] sm:$0xff] }
  0xd3   :  { %1725 = vmatpush1.bf16.msra.mxu0 %v1724_v10  ;;  %v237_v10 = vld [vmem:[#allocation5 + $0x2c0] sm:$0xff] }
  0xd4   :  { %1727 = vmatprep.subr.bf16.mxu0 %v1726_v11  ;;  %v239_v11 = vld [vmem:[#allocation5 + $0x2d0] sm:$0xff] }
  0xd5   :  { %v1768_v14 = vpack.c.bf16 %v239_v11, %v237_v10  ;;  %v147_v10 = vld [vmem:[#allocation2 + $0x10] sm:$0xff]  ;;  %v1808_v11 = vpack.c.bf16 %v434_v7, %v433_v6 }
  0xd6   :  { %v572_v6 = vld [vmem:[#allocation11 + $0xe8] sm:$0xff] }
  0xd7   :  { %1729 = vmatpush1.bf16.msra.mxu0 %v1728_v16  ;;  %v241_v16 = vld [vmem:[#allocation5 + $0x2e0] sm:$0xff] }
  0xd8   :  { %1731 = vmatprep.subr.bf16.mxu0 %v1730_v17  ;;  %v243_v17 = vld [vmem:[#allocation5 + $0x2f0] sm:$0xff] }
  0xd9   :  { %v1772_v20 = vpack.c.bf16 %v243_v17, %v241_v16  ;;  %v454_v16 = vld [vmem:[#allocation8 + $0xa8] sm:$0xff] }
  0xdb   :  { %1733 = vmatpush1.bf16.msra.mxu0 %v1732_v22  ;;  %v245_v22 = vld [vmem:[#allocation5 + $0x300] sm:$0xff] }
  0xdc   :  { %1735 = vmatprep.subr.bf16.mxu0 %v1734_v23  ;;  %v247_v23 = vld [vmem:[#allocation5 + $0x310] sm:$0xff] }
  0xdd   :  { %v1776_v26 = vpack.c.bf16 %v247_v23, %v245_v22  ;;  %v456_v22 = vld [vmem:[#allocation8 + $0xb8] sm:$0xff] }
  0xdf   :  { %1737 = vmatpush1.bf16.msra.mxu0 %v1736_v28  ;;  %v249_v28 = vld [vmem:[#allocation5 + $0x320] sm:$0xff] }
  0xe0   :  { %1739 = vmatprep.subr.bf16.mxu0 %v1738_v29  ;;  %v251_v29 = vld [vmem:[#allocation5 + $0x330] sm:$0xff] }
  0xe1   :  { %v1780_v32 = vpack.c.bf16 %v251_v29, %v249_v28  ;;  %v458_v28 = vld [vmem:[#allocation8 + $0xc8] sm:$0xff] }
  0xe3   :  { %1741 = vmatpush1.bf16.msra.mxu0 %v1740_v34  ;;  %v253_v34 = vld [vmem:[#allocation5 + $0x340] sm:$0xff] }
  0xe4   :  { %1743 = vmatprep.subr.bf16.mxu0 %v1742_v35  ;;  %v255_v35 = vld [vmem:[#allocation5 + $0x350] sm:$0xff] }
  0xe5   :  { %v1784_v38 = vpack.c.bf16 %v255_v35, %v253_v34  ;;  %v460_v34 = vld [vmem:[#allocation8 + $0xd8] sm:$0xff] }
  0xe6   :  { %354 = vmatmul.mubr.f32.vlgmr.msra.gmra.mrb[0].mxu0 %v145_v40  ;;  %v257_v40 = vld [vmem:[#allocation5 + $0x360] sm:$0xff] }
  0xe7   :  { %1745 = vmatpush1.bf16.msra.mxu0 %v1744_v41  ;;  %424 = vmatprep.mubr.f32.mxu0 %v148_v45  ;;  %v259_v41 = vld [vmem:[#allocation5 + $0x370] sm:$0xff] }
  0xe8   :  { %1747 = vmatprep.subr.bf16.mxu0 %v1746_v42  ;;  %v262_v42 = vld [vmem:[#allocation5 + $0x388] sm:$0xff]  ;;  %v1788_v44 = vpack.c.bf16 %v259_v41, %v257_v40 }
  0xe9   :  { %v1790_v45 = vpack.c.bf16 %v264_v43, %v262_v42  ;;  %v462_v40 = vld [vmem:[#allocation8 + $0xe8] sm:$0xff]  ;;  %v445_v43 = vld [vmem:[#allocation8 + $0x60] sm:$0xff] }
  0xeb   :  { %1749 = vmatpush1.bf16.msra.mxu0 %v1748_v48  ;;  %v266_v48 = vld [vmem:[#allocation5 + $0x3a8] sm:$0xff] }
  0xec   :  { %1751 = vmatprep.subr.bf16.mxu0 %v1750_v49  ;;  %v268_v49 = vld [vmem:[#allocation5 + $0x3b8] sm:$0xff] }
  0xed   :  { %v1794_v51 = vpack.c.bf16 %v268_v49, %v266_v48  ;;  %v1834_v48 = vpack.c.bf16 %v464_v47, %v463_v46  ;;  %v447_v49 = vld [vmem:[#allocation8 + $0x70] sm:$0xff]  ;;  %v599_v46 = vld [vmem:[#allocation11 + $0x1c0] sm:$0xff] }
  0xee   :  { %v603_v47 = vld [vmem:[#allocation11 + $0x1e0] sm:$0xff] }
  0xef   :  { %1753 = vmatpush1.bf16.msra.mxu0 %v1752_v54  ;;  %v270_v54 = vld [vmem:[#allocation5 + $0x3c8] sm:$0xff] }
  0xf0   :  { %1755 = vmatprep.subr.bf16.mxu0 %v1754_v55  ;;  %v272_v55 = vld [vmem:[#allocation5 + $0x3d8] sm:$0xff] }
  0xf1   :  { %v1798_v57 = vpack.c.bf16 %v272_v55, %v270_v54  ;;  %v543_v54 = vld [vmem:[#allocation11] sm:$0xff]  ;;  %v1838_v55 = vpack.c.bf16 %v548_v53, %v544_v52  ;;  %v2570_v52 = vmov 0.0  }
  0xf2   :  { %693 = vmatprep.mubr.f32.mxu1 %v2570_v52  ;;  %v778_v53 = vld [vmem:[#allocation14 + $0x18] sm:$0xff] }
  0xf3   :  { %1757 = vmatpush1.bf16.msra.mxu0 %v1756_v60  ;;  %v274_v60 = vld [vmem:[#allocation5 + $0x3e8] sm:$0xff]  ;;  %1839 = vmatprep.subr.bf16.mxu1 %v1838_v55 }
  0xf4   :  { %1759 = vmatprep.subr.bf16.mxu0 %v1758_v61  ;;  %v276_v61 = vld [vmem:[#allocation5 + $0x3f8] sm:$0xff] }
  0xf5   :  { %v1802_v63 = vpack.c.bf16 %v276_v61, %v274_v60  ;;  %v551_v61 = vld [vmem:[#allocation11 + $0x40] sm:$0xff] }
  0xf7   :  { %1761 = vmatpush1.bf16.msra.mxu0 %v1760_v2  ;;  %v449_v2 = vld [vmem:[#allocation8 + $0x80] sm:$0xff] }
  0xf8   :  { %1763 = vmatprep.subr.bf16.mxu0 %v1762_v3  ;;  %v450_v3 = vld [vmem:[#allocation8 + $0x88] sm:$0xff] }
  0xf9   :  { %v1806_v5 = vpack.c.bf16 %v450_v3, %v449_v2  ;;  %v559_v3 = vld [vmem:[#allocation11 + $0x80] sm:$0xff] }
  0xfb   :  { %1765 = vmatpush1.bf16.msra.mxu0 %v1764_v8  ;;  %v451_v8 = vld [vmem:[#allocation8 + $0x90] sm:$0xff] }
  0xfc   :  { %1767 = vmatprep.subr.bf16.mxu0 %v1766_v9  ;;  %v452_v9 = vld [vmem:[#allocation8 + $0x98] sm:$0xff] }
  0xfd   :  { %v1810_v12 = vpack.c.bf16 %v452_v9, %v451_v8  ;;  %v567_v9 = vld [vmem:[#allocation11 + $0xc0] sm:$0xff] }
  0xff   :  { %1769 = vmatpush1.bf16.msra.mxu0 %v1768_v14  ;;  %v436_v14 = vld [vmem:[#allocation8 + $0x18] sm:$0xff] }
 0x100   :  { %1771 = vmatprep.subr.bf16.mxu0 %v1770_v15  ;;  %v453_v15 = vld [vmem:[#allocation8 + $0xa0] sm:$0xff]  ;;  %v1812_v17 = vpack.c.bf16 %v436_v14, %v435_v13 }
 0x101   :  { %v1814_v18 = vpack.c.bf16 %v454_v16, %v453_v15  ;;  %v575_v15 = vld [vmem:[#allocation11 + $0x100] sm:$0xff] }
 0x102   :  { %v579_v16 = vld [vmem:[#allocation11 + $0x120] sm:$0xff] }
 0x103   :  { %1773 = vmatpush1.bf16.msra.mxu0 %v1772_v20  ;;  %v438_v20 = vld [vmem:[#allocation8 + $0x28] sm:$0xff] }
 0x104   :  { %1775 = vmatprep.subr.bf16.mxu0 %v1774_v21  ;;  %v455_v21 = vld [vmem:[#allocation8 + $0xb0] sm:$0xff]  ;;  %v1816_v23 = vpack.c.bf16 %v438_v20, %v437_v19  ;;  %v1856_v19 = vpack.c.bf16 %v579_v16, %v575_v15 }
 0x105   :  { %v1818_v24 = vpack.c.bf16 %v456_v22, %v455_v21  ;;  %v583_v21 = vld [vmem:[#allocation11 + $0x140] sm:$0xff]  ;;  %v825_v16 = vld [vmem:[#allocation14 + $0x190] sm:$0xff] }
 0x106   :  { %v587_v22 = vld [vmem:[#allocation11 + $0x160] sm:$0xff] }
 0x107   :  { %1777 = vmatpush1.bf16.msra.mxu0 %v1776_v26  ;;  %v440_v26 = vld [vmem:[#allocation8 + $0x38] sm:$0xff] }
 0x108   :  { %1779 = vmatprep.subr.bf16.mxu0 %v1778_v27  ;;  %v457_v27 = vld [vmem:[#allocation8 + $0xc0] sm:$0xff]  ;;  %v1820_v29 = vpack.c.bf16 %v440_v26, %v439_v25  ;;  %v1860_v25 = vpack.c.bf16 %v587_v22, %v583_v21  ;;  %v837_v22 = vld [vmem:[#allocation14 + $0x1f0] sm:$0xff] }
 0x109   :  { %v1822_v30 = vpack.c.bf16 %v458_v28, %v457_v27  ;;  %v279_v27 = vlaneseq }
 0x10b   :  { %1781 = vmatpush1.bf16.msra.mxu0 %v1780_v32  ;;  %v442_v32 = vld [vmem:[#allocation8 + $0x48] sm:$0xff]  ;;  %v2730_v28 = vshrl.u32 %v279_v27, 7 }
 0x10c   :  { %1783 = vmatprep.subr.bf16.mxu0 %v1782_v33  ;;  %v459_v33 = vld [vmem:[#allocation8 + $0xd0] sm:$0xff]  ;;  %v1824_v35 = vpack.c.bf16 %v442_v32, %v441_v31 }
 0x10d   :  { %v1826_v36 = vpack.c.bf16 %v460_v34, %v459_v33  ;;  %v2736_v31 = vsub.s32 1, %v2730_v28 }
 0x10f   :  { %1785 = vmatpush1.bf16.msra.mxu0 %v1784_v38  ;;  %v444_v38 = vld [vmem:[#allocation8 + $0x58] sm:$0xff] }
 0x110   :  { %1787 = vmatprep.subr.bf16.mxu0 %v1786_v39  ;;  %v461_v39 = vld [vmem:[#allocation8 + $0xe0] sm:$0xff]  ;;  %v1828_v41 = vpack.c.bf16 %v444_v38, %v443_v37 }
 0x111   :  { %v1830_v42 = vpack.c.bf16 %v462_v40, %v461_v39  ;;  %v591_v40 = vld [vmem:[#allocation11 + $0x180] sm:$0xff] }
 0x113   :  { %1789 = vmatpush1.bf16.msra.mxu0 %v1788_v44  ;;  %v446_v44 = vld [vmem:[#allocation8 + $0x68] sm:$0xff] }
 0x114   :  { %1791 = vmatprep.subr.bf16.mxu0 %v1790_v45  ;;  %v1832_v45 = vpack.c.bf16 %v446_v44, %v445_v43  ;;  %v600_v43 = vld [vmem:[#allocation11 + $0x1c8] sm:$0xff] }
 0x115   :  { %v604_v44 = vld [vmem:[#allocation11 + $0x1e8] sm:$0xff] }
 0x117   :  { %1793 = vmatpush1.bf16.msra.mxu0 %v1792_v50  ;;  %v448_v50 = vld [vmem:[#allocation8 + $0x78] sm:$0xff] }
 0x118   :  { %1795 = vmatprep.subr.bf16.mxu0 %v1794_v51  ;;  %v1836_v51 = vpack.c.bf16 %v448_v50, %v447_v49  ;;  %v546_v49 = vld [vmem:[#allocation11 + $0x18] sm:$0xff] }
 0x119   :  { %v550_v50 = vld [vmem:[#allocation11 + $0x38] sm:$0xff] }
 0x11b   :  { %1797 = vmatpush1.bf16.msra.mxu0 %v1796_v56  ;;  %v547_v56 = vld [vmem:[#allocation11 + $0x20] sm:$0xff] }
 0x11c   :  { %1799 = vmatprep.subr.bf16.mxu0 %v1798_v57  ;;  %v552_v57 = vld [vmem:[#allocation11 + $0x48] sm:$0xff]  ;;  %v1840_v59 = vpack.c.bf16 %v547_v56, %v543_v54  ;;  %v777_v56 = vld [vmem:[#allocation14 + $0x10] sm:$0xff] }
 0x11d   :  { %v1842_v60 = vpack.c.bf16 %v556_v58, %v552_v57  ;;  %v784_v54 = vld [vmem:[#allocation14 + $0x48] sm:$0xff]  ;;  %v783_v57 = vld [vmem:[#allocation14 + $0x40] sm:$0xff] }
 0x11e   :  { %1841 = vmatpush1.bf16.msra.mxu1 %v1840_v59  ;;  %v2030_v55 = vpack.c.bf16 %v784_v54, %v778_v53  ;;  %v2032_v58 = vpack.c.bf16 %v783_v57, %v777_v56  ;;  %v790_v59 = vld [vmem:[#allocation14 + $0x78] sm:$0xff]  ;;  %v904_v54 = vld [vmem:[#allocation14 + $0x408] sm:$0xff]  ;;  %v897_v56 = vld [vmem:[#allocation14 + $0x3d0] sm:$0xff] }
 0x11f   :  { %1801 = vmatpush1.bf16.msra.mxu0 %v1800_v62  ;;  %v555_v62 = vld [vmem:[#allocation11 + $0x60] sm:$0xff]  ;;  %1843 = vmatprep.subr.bf16.mxu1 %v1842_v60  ;;  %v796_v60 = vld [vmem:[#allocation14 + $0xa8] sm:$0xff] }
 0x120   :  { %1803 = vmatprep.subr.bf16.mxu0 %v1802_v63  ;;  %v560_v63 = vld [vmem:[#allocation11 + $0x88] sm:$0xff]  ;;  %v1844_v1 = vpack.c.bf16 %v555_v62, %v551_v61  ;;  %v2034_v61 = vpack.c.bf16 %v796_v60, %v790_v59  ;;  %v789_v62 = vld [vmem:[#allocation14 + $0x70] sm:$0xff]  ;;  %v898_v53 = vld [vmem:[#allocation14 + $0x3d8] sm:$0xff] }
 0x121   :  { %v1846_v2 = vpack.c.bf16 %v564_v0, %v560_v63  ;;  %v795_v63 = vld [vmem:[#allocation14 + $0xa0] sm:$0xff]  ;;  %v910_v59 = vld [vmem:[#allocation14 + $0x438] sm:$0xff]  ;;  %v916_v60 = vld [vmem:[#allocation14 + $0x468] sm:$0xff] }
 0x122   :  { %1845 = vmatpush1.bf16.msra.mxu1 %v1844_v1  ;;  %v2036_v0 = vpack.c.bf16 %v795_v63, %v789_v62  ;;  %v802_v1 = vld [vmem:[#allocation14 + $0xd8] sm:$0xff]  ;;  %v903_v57 = vld [vmem:[#allocation14 + $0x400] sm:$0xff]  ;;  %v909_v62 = vld [vmem:[#allocation14 + $0x430] sm:$0xff] }
 0x123   :  { %1805 = vmatpush1.bf16.msra.mxu0 %v1804_v4  ;;  %v563_v4 = vld [vmem:[#allocation11 + $0xa0] sm:$0xff]  ;;  %1847 = vmatprep.subr.bf16.mxu1 %v1846_v2  ;;  %v808_v2 = vld [vmem:[#allocation14 + $0x108] sm:$0xff] }
 0x124   :  { %1807 = vmatprep.subr.bf16.mxu0 %v1806_v5  ;;  %v568_v5 = vld [vmem:[#allocation11 + $0xc8] sm:$0xff]  ;;  %v1848_v7 = vpack.c.bf16 %v563_v4, %v559_v3  ;;  %v2038_v3 = vpack.c.bf16 %v808_v2, %v802_v1  ;;  %v801_v4 = vld [vmem:[#allocation14 + $0xd0] sm:$0xff]  ;;  %v922_v1 = vld [vmem:[#allocation14 + $0x498] sm:$0xff] }
 0x125   :  { %v1850_v8 = vpack.c.bf16 %v572_v6, %v568_v5  ;;  %v807_v5 = vld [vmem:[#allocation14 + $0x100] sm:$0xff]  ;;  %v928_v2 = vld [vmem:[#allocation14 + $0x4c8] sm:$0xff] }
 0x126   :  { %425 = vmatmul.mubr.f32.vlgmr.msra.gmra.mrb[0].mxu0 %v147_v10  ;;  %v571_v10 = vld [vmem:[#allocation11 + $0xe0] sm:$0xff]  ;;  %1849 = vmatpush1.bf16.msra.mxu1 %v1848_v7  ;;  %v2040_v6 = vpack.c.bf16 %v807_v5, %v801_v4  ;;  %v921_v4 = vld [vmem:[#allocation14 + $0x490] sm:$0xff] }
 0x127   :  { %1809 = vmatpush3.bf16.msra.mxu0 %v1808_v11  ;;  %v576_v11 = vld [vmem:[#allocation11 + $0x108] sm:$0xff]  ;;  %v1852_v13 = vpack.c.bf16 %v571_v10, %v567_v9  ;;  %1851 = vmatprep.subr.bf16.mxu1 %v1850_v8  ;;  %v814_v7 = vld [vmem:[#allocation14 + $0x138] sm:$0xff]  ;;  %v813_v10 = vld [vmem:[#allocation14 + $0x130] sm:$0xff] }
 0x128   :  { %1811 = vmatprep.subr.bf16.mxu0 %v1810_v12  ;;  %v580_v12 = vld [vmem:[#allocation11 + $0x128] sm:$0xff] }
 0x129   :  { %v1854_v14 = vpack.c.bf16 %v580_v12, %v576_v11  ;;  %v820_v8 = vld [vmem:[#allocation14 + $0x168] sm:$0xff]  ;;  %v819_v11 = vld [vmem:[#allocation14 + $0x160] sm:$0xff] }
 0x12a   :  { %1853 = vmatpush1.bf16.msra.mxu1 %v1852_v13  ;;  %v2042_v9 = vpack.c.bf16 %v820_v8, %v814_v7  ;;  %v2044_v12 = vpack.c.bf16 %v819_v11, %v813_v10  ;;  %v826_v13 = vld [vmem:[#allocation14 + $0x198] sm:$0xff]  ;;  %v915_v63 = vld [vmem:[#allocation14 + $0x460] sm:$0xff]  ;;  %v940_v8 = vld [vmem:[#allocation14 + $0x528] sm:$0xff] }
 0x12b   :  { %1813 = vmatpush3.bf16.msra.mxu0 %v1812_v17  ;;  %v584_v17 = vld [vmem:[#allocation11 + $0x148] sm:$0xff]  ;;  %1855 = vmatprep.subr.bf16.mxu1 %v1854_v14  ;;  %v934_v7 = vld [vmem:[#allocation14 + $0x4f8] sm:$0xff]  ;;  %v933_v10 = vld [vmem:[#allocation14 + $0x4f0] sm:$0xff] }
 0x12c   :  { %1815 = vmatprep.subr.bf16.mxu0 %v1814_v18  ;;  %v588_v18 = vld [vmem:[#allocation11 + $0x168] sm:$0xff] }
 0x12d   :  { %v1858_v20 = vpack.c.bf16 %v588_v18, %v584_v17  ;;  %v832_v14 = vld [vmem:[#allocation14 + $0x1c8] sm:$0xff]  ;;  %v831_v17 = vld [vmem:[#allocation14 + $0x1c0] sm:$0xff] }
 0x12e   :  { %1857 = vmatpush1.bf16.msra.mxu1 %v1856_v19  ;;  %v2046_v15 = vpack.c.bf16 %v832_v14, %v826_v13  ;;  %v2048_v18 = vpack.c.bf16 %v831_v17, %v825_v16  ;;  %v838_v19 = vld [vmem:[#allocation14 + $0x1f8] sm:$0xff]  ;;  %v927_v5 = vld [vmem:[#allocation14 + $0x4c0] sm:$0xff]  ;;  %v952_v14 = vld [vmem:[#allocation14 + $0x588] sm:$0xff] }
 0x12f   :  { %1817 = vmatpush3.bf16.msra.mxu0 %v1816_v23  ;;  %v592_v23 = vld [vmem:[#allocation11 + $0x188] sm:$0xff]  ;;  %1859 = vmatprep.subr.bf16.mxu1 %v1858_v20  ;;  %v946_v13 = vld [vmem:[#allocation14 + $0x558] sm:$0xff]  ;;  %v945_v16 = vld [vmem:[#allocation14 + $0x550] sm:$0xff] }
 0x130   :  { %1819 = vmatprep.subr.bf16.mxu0 %v1818_v24  ;;  %v596_v24 = vld [vmem:[#allocation11 + $0x1a8] sm:$0xff] }
 0x131   :  { %v1862_v26 = vpack.c.bf16 %v596_v24, %v592_v23  ;;  %v844_v20 = vld [vmem:[#allocation14 + $0x228] sm:$0xff]  ;;  %v843_v23 = vld [vmem:[#allocation14 + $0x220] sm:$0xff] }
 0x132   :  { %1861 = vmatpush1.bf16.msra.mxu1 %v1860_v25  ;;  %v2050_v21 = vpack.c.bf16 %v844_v20, %v838_v19  ;;  %v2052_v24 = vpack.c.bf16 %v843_v23, %v837_v22  ;;  %v850_v25 = vld [vmem:[#allocation14 + $0x258] sm:$0xff]  ;;  %v939_v11 = vld [vmem:[#allocation14 + $0x520] sm:$0xff]  ;;  %v545_v23 = vld [vmem:[#allocation11 + $0x10] sm:$0xff] }
 0x133   :  { %1821 = vmatpush3.bf16.msra.mxu0 %v1820_v29  ;;  %1863 = vmatprep.subr.bf16.mxu1 %v1862_v26  ;;  %v2733_v29 = vsub.s32 0, %v2730_v28  ;;  %v856_v26 = vld [vmem:[#allocation14 + $0x288] sm:$0xff]  ;;  %v951_v17 = vld [vmem:[#allocation14 + $0x580] sm:$0xff]  ;;  %v1642_v20 = vld [vmem:[#allocation10] ss:$0 sm:$0xff] }
 0x134   :  { %1823 = vmatprep.subr.bf16.mxu0 %v1822_v30  ;;  %v277_v30 = vld [vmem:[#allocation7] sm:$0x3]  ;;  %v2054_v27 = vpack.c.bf16 %v856_v26, %v850_v25 }
 0x135   :  { %v282_v32 = vrot.slane %v277_v30, %v2733_v29  ;;  %v286_v33 = vrot.slane %v277_v30, %v2736_v31  ;;  %v849_v30 = vld [vmem:[#allocation14 + $0x250] sm:$0xff] }
 0x136   :  { %v554_v25 = vld [vmem:[#allocation11 + $0x58] sm:$0xff] }
 0x137   :  { %1825 = vmatpush3.bf16.msra.mxu0 %v1824_v35  ;;  %v558_v26 = vld [vmem:[#allocation11 + $0x78] sm:$0xff] }
 0x138   :  { %1827 = vmatprep.subr.bf16.mxu0 %v1826_v36 }
 0x13b   :  { %1829 = vmatpush3.bf16.msra.mxu0 %v1828_v41  ;;  %v595_v41 = vld [vmem:[#allocation11 + $0x1a0] sm:$0xff] }
 0x13c   :  { %1831 = vmatprep.subr.bf16.mxu0 %v1830_v42  ;;  %v1864_v42 = vpack.c.bf16 %v595_v41, %v591_v40  ;;  %v874_v40 = vld [vmem:[#allocation14 + $0x318] sm:$0xff]  ;;  %v880_v41 = vld [vmem:[#allocation14 + $0x348] sm:$0xff] }
 0x13e   :  { %1865 = vmatpush1.bf16.msra.mxu1 %v1864_v42  ;;  %v2062_v42 = vpack.c.bf16 %v880_v41, %v874_v40  ;;  %v561_v40 = vld [vmem:[#allocation11 + $0x90] sm:$0xff] }
 0x13f   :  { %1833 = vmatpush3.bf16.msra.mxu0 %v1832_v45  ;;  %v1866_v45 = vpack.c.bf16 %v604_v44, %v600_v43  ;;  %v873_v43 = vld [vmem:[#allocation14 + $0x310] sm:$0xff]  ;;  %v879_v44 = vld [vmem:[#allocation14 + $0x340] sm:$0xff] }
 0x140   :  { %1835 = vmatprep.subr.bf16.mxu0 %v1834_v48  ;;  %v1868_v48 = vpack.c.bf16 %v603_v47, %v599_v46  ;;  %v886_v46 = vld [vmem:[#allocation14 + $0x378] sm:$0xff]  ;;  %v892_v47 = vld [vmem:[#allocation14 + $0x3a8] sm:$0xff] }
 0x141   :  { %1867 = vmatprep.subr.bf16.mxu1 %v1866_v45  ;;  %v2064_v45 = vpack.c.bf16 %v879_v44, %v873_v43  ;;  %v565_v41 = vld [vmem:[#allocation11 + $0xb0] sm:$0xff]  ;;  %v574_v43 = vld [vmem:[#allocation11 + $0xf8] sm:$0xff] }
 0x142   :  { %1869 = vmatpush1.bf16.msra.mxu1 %v1868_v48  ;;  %v2066_v48 = vpack.c.bf16 %v892_v47, %v886_v46  ;;  %v1880_v44 = vpack.c.bf16 %v565_v41, %v561_v40  ;;  %v569_v46 = vld [vmem:[#allocation11 + $0xd0] sm:$0xff] }
 0x143   :  { %1837 = vmatpush3.bf16.msra.mxu0 %v1836_v51  ;;  %v1870_v51 = vpack.c.bf16 %v550_v50, %v546_v49  ;;  %v885_v49 = vld [vmem:[#allocation14 + $0x370] sm:$0xff]  ;;  %v891_v50 = vld [vmem:[#allocation14 + $0x3a0] sm:$0xff]  ;;  %v836_v41 = vld [vmem:[#allocation14 + $0x1e8] sm:$0xff] }
 0x144   :  { %2031 = vmatprep.subr.bf16.mxu0 %v2030_v55  ;;  %v2070_v55 = vpack.c.bf16 %v904_v54, %v898_v53  ;;  %v573_v47 = vld [vmem:[#allocation11 + $0xf0] sm:$0xff]  ;;  %v586_v54 = vld [vmem:[#allocation11 + $0x158] sm:$0xff] }
 0x145   :  { %1871 = vmatprep.subr.bf16.mxu1 %v1870_v51  ;;  %v2068_v51 = vpack.c.bf16 %v891_v50, %v885_v49  ;;  %v582_v49 = vld [vmem:[#allocation11 + $0x138] sm:$0xff]  ;;  %v1884_v50 = vpack.c.bf16 %v573_v47, %v569_v46  ;;  %v577_v53 = vld [vmem:[#allocation11 + $0x110] sm:$0xff] }
 0x146   :  { %v829_v40 = vld [vmem:[#allocation14 + $0x1b0] sm:$0xff]  ;;  %v848_v47 = vld [vmem:[#allocation14 + $0x248] sm:$0xff] }
 0x147   :  { %v841_v46 = vld [vmem:[#allocation14 + $0x210] sm:$0xff] }
 0x1f9   :  { %v426_v34 = vpop.f32.mrb[0].mxu0 }
 0x1fa   :  { %v2286_v35 = vadd.f32 %v426_v34, %v282_v32  ;;  %v428_v36 = vpop.f32.mrb[1].mxu0  ;;  %v855_v32 = vld [vmem:[#allocation14 + $0x280] sm:$0xff]  ;;  %v862_v34 = vld [vmem:[#allocation14 + $0x2b8] sm:$0xff] }
 0x1fb   :  { %v2287_v37 = vadd.f32 %v428_v36, %v286_v33  ;;  %v2056_v33 = vpack.c.bf16 %v855_v32, %v849_v30 }
 0x1fc   :  { %v431_v39 = vmax.f32 %v2286_v35, 0.0  ;;  %v868_v35 = vld [vmem:[#allocation14 + $0x2e8] sm:$0xff] }
 0x1fd   :  { %v432_v38 = vmax.f32 %v2287_v37, 0.0  ;;  %v2058_v36 = vpack.c.bf16 %v868_v35, %v862_v34  ;;  %v861_v37 = vld [vmem:[#allocation14 + $0x2b0] sm:$0xff] }
 0x1fe   :  { %v553_v34 = vld [vmem:[#allocation11 + $0x50] sm:$0xff] }
 0x1ff   :  { %536 = vmatprep.mubr.f32.mxu0 %v432_v38  ;;  %v867_v38 = vld [vmem:[#allocation14 + $0x2e0] sm:$0xff]  ;;  %v557_v35 = vld [vmem:[#allocation11 + $0x70] sm:$0xff] }
 0x200   :  { %537 = vmatmul.mubr.f32.vlgmr.msra.gmra.mrb[2].mxu0 %v431_v39  ;;  %v2060_v39 = vpack.c.bf16 %v867_v38, %v861_v37  ;;  %v566_v37 = vld [vmem:[#allocation11 + $0xb8] sm:$0xff]  ;;  %v1876_v38 = vpack.c.bf16 %v557_v35, %v553_v34  ;;  %v811_v35 = vld [vmem:[#allocation14 + $0x120] sm:$0xff] }
 0x201   :  { %2033 = vmatpush1.bf16.msra.mxu0 %v2032_v58  ;;  %v2072_v58 = vpack.c.bf16 %v903_v57, %v897_v56 }
 0x202   :  { %2035 = vmatprep.subr.bf16.mxu0 %v2034_v61  ;;  %v2074_v61 = vpack.c.bf16 %v916_v60, %v910_v59  ;;  %v589_v59 = vld [vmem:[#allocation11 + $0x170] sm:$0xff]  ;;  %v594_v60 = vld [vmem:[#allocation11 + $0x198] sm:$0xff] }
 0x205   :  { %2037 = vmatpush1.bf16.msra.mxu0 %v2036_v0  ;;  %v2076_v0 = vpack.c.bf16 %v915_v63, %v909_v62 }
 0x206   :  { %2039 = vmatprep.subr.bf16.mxu0 %v2038_v3  ;;  %v2078_v3 = vpack.c.bf16 %v928_v2, %v922_v1  ;;  %v597_v1 = vld [vmem:[#allocation11 + $0x1b0] sm:$0xff]  ;;  %v602_v2 = vld [vmem:[#allocation11 + $0x1d8] sm:$0xff] }
 0x209   :  { %2041 = vmatpush1.bf16.msra.mxu0 %v2040_v6  ;;  %v2080_v6 = vpack.c.bf16 %v927_v5, %v921_v4 }
 0x20a   :  { %2043 = vmatprep.subr.bf16.mxu0 %v2042_v9  ;;  %v2082_v9 = vpack.c.bf16 %v940_v8, %v934_v7  ;;  %v605_v7 = vld [vmem:[#allocation11 + $0x1f0] sm:$0xff] }
 0x20b   :  { %v776_v8 = vld [vmem:[#allocation14 + $0x8] sm:$0xff] }
 0x20d   :  { %2045 = vmatpush1.bf16.msra.mxu0 %v2044_v12  ;;  %v2084_v12 = vpack.c.bf16 %v939_v11, %v933_v10 }
 0x20e   :  { %2047 = vmatprep.subr.bf16.mxu0 %v2046_v15  ;;  %v2086_v15 = vpack.c.bf16 %v952_v14, %v946_v13  ;;  %v781_v13 = vld [vmem:[#allocation14 + $0x30] sm:$0xff]  ;;  %v788_v14 = vld [vmem:[#allocation14 + $0x68] sm:$0xff] }
 0x211   :  { %2049 = vmatpush1.bf16.msra.mxu0 %v2048_v18  ;;  %v2088_v18 = vpack.c.bf16 %v951_v17, %v945_v16 }
 0x212   :  { %2051 = vmatprep.subr.bf16.mxu0 %v2050_v21 }
 0x215   :  { %2053 = vmatpush1.bf16.msra.mxu0 %v2052_v24  ;;  %v549_v24 = vld [vmem:[#allocation11 + $0x30] sm:$0xff] }
 0x216   :  { %2055 = vmatprep.subr.bf16.mxu0 %v2054_v27  ;;  %v1872_v30 = vpack.c.bf16 %v549_v24, %v545_v23  ;;  %v799_v24 = vld [vmem:[#allocation14 + $0xc0] sm:$0xff] }
 0x219   :  { %2057 = vmatpush1.bf16.msra.mxu0 %v2056_v33  ;;  %v1874_v33 = vpack.c.bf16 %v558_v26, %v554_v25  ;;  %v805_v25 = vld [vmem:[#allocation14 + $0xf0] sm:$0xff]  ;;  %v812_v26 = vld [vmem:[#allocation14 + $0x128] sm:$0xff] }
 0x21a   :  { %2059 = vmatprep.subr.bf16.mxu0 %v2058_v36  ;;  %v562_v36 = vld [vmem:[#allocation11 + $0x98] sm:$0xff] }
 0x21d   :  { %2061 = vmatpush1.bf16.msra.mxu0 %v2060_v39  ;;  %v1878_v39 = vpack.c.bf16 %v566_v37, %v562_v36  ;;  %v817_v36 = vld [vmem:[#allocation14 + $0x150] sm:$0xff]  ;;  %v824_v37 = vld [vmem:[#allocation14 + $0x188] sm:$0xff] }
 0x21e   :  { %2063 = vmatprep.subr.bf16.mxu0 %v2062_v42  ;;  %v570_v42 = vld [vmem:[#allocation11 + $0xd8] sm:$0xff] }
 0x221   :  { %2065 = vmatpush1.bf16.msra.mxu0 %v2064_v45  ;;  %v1882_v45 = vpack.c.bf16 %v574_v43, %v570_v42  ;;  %v842_v42 = vld [vmem:[#allocation14 + $0x218] sm:$0xff] }
 0x222   :  { %2067 = vmatprep.subr.bf16.mxu0 %v2066_v48  ;;  %v578_v48 = vld [vmem:[#allocation11 + $0x118] sm:$0xff] }
 0x225   :  { %2069 = vmatpush1.bf16.msra.mxu0 %v2068_v51  ;;  %v1886_v51 = vpack.c.bf16 %v582_v49, %v578_v48  ;;  %v854_v48 = vld [vmem:[#allocation14 + $0x278] sm:$0xff] }
 0x226   :  { %2071 = vmatprep.subr.bf16.mxu0 %v2070_v55  ;;  %v590_v55 = vld [vmem:[#allocation11 + $0x178] sm:$0xff] }
 0x227   :  { %v1890_v57 = vpack.c.bf16 %v590_v55, %v586_v54  ;;  %v866_v54 = vld [vmem:[#allocation14 + $0x2d8] sm:$0xff] }
 0x229   :  { %2073 = vmatpush1.bf16.msra.mxu0 %v2072_v58  ;;  %v585_v58 = vld [vmem:[#allocation11 + $0x150] sm:$0xff] }
 0x22a   :  { %2075 = vmatprep.subr.bf16.mxu0 %v2074_v61  ;;  %v598_v61 = vld [vmem:[#allocation11 + $0x1b8] sm:$0xff]  ;;  %v1892_v62 = vpack.c.bf16 %v589_v59, %v585_v58  ;;  %v872_v59 = vld [vmem:[#allocation14 + $0x308] sm:$0xff] }
 0x22b   :  { %v1894_v63 = vpack.c.bf16 %v598_v61, %v594_v60  ;;  %v865_v58 = vld [vmem:[#allocation14 + $0x2d0] sm:$0xff]  ;;  %v878_v60 = vld [vmem:[#allocation14 + $0x338] sm:$0xff] }
 0x22d   :  { %2077 = vmatpush1.bf16.msra.mxu0 %v2076_v0  ;;  %v593_v0 = vld [vmem:[#allocation11 + $0x190] sm:$0xff] }
 0x22e   :  { %2079 = vmatprep.subr.bf16.mxu0 %v2078_v3  ;;  %v606_v3 = vld [vmem:[#allocation11 + $0x1f8] sm:$0xff]  ;;  %v1896_v4 = vpack.c.bf16 %v597_v1, %v593_v0  ;;  %v884_v1 = vld [vmem:[#allocation14 + $0x368] sm:$0xff] }
 0x22f   :  { %v1898_v5 = vpack.c.bf16 %v606_v3, %v602_v2  ;;  %v877_v0 = vld [vmem:[#allocation14 + $0x330] sm:$0xff]  ;;  %v890_v2 = vld [vmem:[#allocation14 + $0x398] sm:$0xff] }
 0x231   :  { %2081 = vmatpush1.bf16.msra.mxu0 %v2080_v6  ;;  %v601_v6 = vld [vmem:[#allocation11 + $0x1d0] sm:$0xff] }
 0x232   :  { %2083 = vmatprep.subr.bf16.mxu0 %v2082_v9  ;;  %v782_v9 = vld [vmem:[#allocation14 + $0x38] sm:$0xff]  ;;  %v1900_v10 = vpack.c.bf16 %v605_v7, %v601_v6  ;;  %v889_v6 = vld [vmem:[#allocation14 + $0x390] sm:$0xff]  ;;  %v896_v7 = vld [vmem:[#allocation14 + $0x3c8] sm:$0xff] }
 0x233   :  { %v1902_v11 = vpack.c.bf16 %v782_v9, %v776_v8  ;;  %v902_v8 = vld [vmem:[#allocation14 + $0x3f8] sm:$0xff] }
 0x235   :  { %2085 = vmatpush1.bf16.msra.mxu0 %v2084_v12  ;;  %v775_v12 = vld [vmem:[#allocation14] sm:$0xff] }
 0x236   :  { %2087 = vmatprep.subr.bf16.mxu0 %v2086_v15  ;;  %v794_v15 = vld [vmem:[#allocation14 + $0x98] sm:$0xff]  ;;  %v1904_v16 = vpack.c.bf16 %v781_v13, %v775_v12  ;;  %v901_v12 = vld [vmem:[#allocation14 + $0x3f0] sm:$0xff]  ;;  %v908_v13 = vld [vmem:[#allocation14 + $0x428] sm:$0xff] }
 0x237   :  { %v1906_v17 = vpack.c.bf16 %v794_v15, %v788_v14  ;;  %v914_v14 = vld [vmem:[#allocation14 + $0x458] sm:$0xff] }
 0x239   :  { %2089 = vmatpush1.bf16.msra.mxu0 %v2088_v18  ;;  %v787_v18 = vld [vmem:[#allocation14 + $0x60] sm:$0xff] }
 0x2d3   :  { %v1675_v19 = vpop.f32.mrb[2].mxu0 }
 0x2d4   :  { %v1676_v21 = vpop.f32.mrb[3].mxu0 }
 0x2d5   :  { %v1677_v22 = vadd.f32 %v1676_v21, %v1675_v19  ;;  %v793_v19 = vld [vmem:[#allocation14 + $0x90] sm:$0xff]  ;;  %v806_v21 = vld [vmem:[#allocation14 + $0xf8] sm:$0xff] }
 0x2d7   :  { %v2741_v27 = vadd.f32 %v1677_v22, %v1642_v20  ;;  %v800_v20 = vld [vmem:[#allocation14 + $0xc8] sm:$0xff]  ;;  %v1908_v22 = vpack.c.bf16 %v793_v19, %v787_v18  ;;  %v913_v18 = vld [vmem:[#allocation14 + $0x450] sm:$0xff] }
 0x2d8   :  { %v1910_v23 = vpack.c.bf16 %v806_v21, %v800_v20  ;;  %v920_v19 = vld [vmem:[#allocation14 + $0x488] sm:$0xff]  ;;  %v926_v20 = vld [vmem:[#allocation14 + $0x4b8] sm:$0xff] }
 0x2d9   :  { %v542_v32 = vmax.f32 %v2741_v27, 0.0 }
 0x2db   :  { %694 = vmatmul.mubr.f32.vlgmr.msra.gmra.mrb[0].mxu1 %v542_v32 }
 0x2dc   :  { %1873 = vmatpush1.bf16.msra.mxu1 %v1872_v30  ;;  %764 = vmatprep.mubr.f32.mxu1 %v2570_v52  ;;  %v581_v52 = vld [vmem:[#allocation11 + $0x130] sm:$0xff]  ;;  %v818_v30 = vld [vmem:[#allocation14 + $0x158] sm:$0xff] }
 0x2dd   :  { %1875 = vmatprep.subr.bf16.mxu1 %v1874_v33  ;;  %v1888_v56 = vpack.c.bf16 %v581_v52, %v577_v53  ;;  %v1912_v33 = vpack.c.bf16 %v805_v25, %v799_v24  ;;  %v1914_v34 = vpack.c.bf16 %v818_v30, %v812_v26  ;;  %v853_v53 = vld [vmem:[#allocation14 + $0x270] sm:$0xff]  ;;  %v860_v52 = vld [vmem:[#allocation14 + $0x2a8] sm:$0xff]  ;;  %v938_v26 = vld [vmem:[#allocation14 + $0x518] sm:$0xff] }
 0x2de   :  { %v925_v24 = vld [vmem:[#allocation14 + $0x4b0] sm:$0xff]  ;;  %v932_v25 = vld [vmem:[#allocation14 + $0x4e8] sm:$0xff] }
 0x2e0   :  { %1877 = vmatpush1.bf16.msra.mxu1 %v1876_v38  ;;  %v830_v38 = vld [vmem:[#allocation14 + $0x1b8] sm:$0xff] }
 0x2e1   :  { %1879 = vmatprep.subr.bf16.mxu1 %v1878_v39  ;;  %v1916_v39 = vpack.c.bf16 %v817_v36, %v811_v35  ;;  %v1918_v27 = vpack.c.bf16 %v830_v38, %v824_v37  ;;  %v937_v35 = vld [vmem:[#allocation14 + $0x510] sm:$0xff]  ;;  %v944_v36 = vld [vmem:[#allocation14 + $0x548] sm:$0xff]  ;;  %v950_v37 = vld [vmem:[#allocation14 + $0x578] sm:$0xff] }
 0x2e4   :  { %1881 = vmatpush1.bf16.msra.mxu1 %v1880_v44  ;;  %v1922_v44 = vpack.c.bf16 %v842_v42, %v836_v41  ;;  %v962_v41 = vld [vmem:[#allocation14 + $0x5d8] sm:$0xff] }
 0x2e5   :  { %1883 = vmatprep.subr.bf16.mxu1 %v1882_v45  ;;  %v835_v45 = vld [vmem:[#allocation14 + $0x1e0] sm:$0xff]  ;;  %v958_v42 = vld [vmem:[#allocation14 + $0x5b8] sm:$0xff] }
 0x2e6   :  { %v1924_v49 = vpack.c.bf16 %v841_v46, %v835_v45  ;;  %v957_v46 = vld [vmem:[#allocation14 + $0x5b0] sm:$0xff] }
 0x2e8   :  { %1885 = vmatpush1.bf16.msra.mxu1 %v1884_v50  ;;  %v1926_v50 = vpack.c.bf16 %v854_v48, %v848_v47  ;;  %v963_v47 = vld [vmem:[#allocation14 + $0x5e0] sm:$0xff] }
 0x2e9   :  { %1887 = vmatprep.subr.bf16.mxu1 %v1886_v51  ;;  %v847_v51 = vld [vmem:[#allocation14 + $0x240] sm:$0xff] }
 0x2ea   :  { %v1928_v55 = vpack.c.bf16 %v853_v53, %v847_v51  ;;  %v2092_v51 = vpack.c.bf16 %v963_v47, %v957_v46  ;;  %v968_v53 = vld [vmem:[#allocation14 + $0x608] sm:$0xff]  ;;  %v1011_v46 = vld [vmem:[#allocation14 + $0x760] sm:$0xff] }
 0x2eb   :  { %v1016_v47 = vld [vmem:[#allocation14 + $0x788] sm:$0xff] }
 0x2ec   :  { %1889 = vmatpush1.bf16.msra.mxu1 %v1888_v56  ;;  %v1930_v56 = vpack.c.bf16 %v866_v54, %v860_v52  ;;  %v974_v52 = vld [vmem:[#allocation14 + $0x638] sm:$0xff] }
 0x2ed   :  { %1891 = vmatprep.subr.bf16.mxu1 %v1890_v57  ;;  %v859_v57 = vld [vmem:[#allocation14 + $0x2a0] sm:$0xff]  ;;  %v970_v54 = vld [vmem:[#allocation14 + $0x618] sm:$0xff] }
 0x2ee   :  { %v1932_v61 = vpack.c.bf16 %v865_v58, %v859_v57  ;;  %v1966_v58 = vpack.c.bf16 %v974_v52, %v968_v53  ;;  %v1015_v52 = vld [vmem:[#allocation14 + $0x780] sm:$0xff] }
 0x2f0   :  { %1893 = vmatpush1.bf16.msra.mxu1 %v1892_v62  ;;  %v1934_v62 = vpack.c.bf16 %v878_v60, %v872_v59  ;;  %v2749_v59 = vld [vmem:[#allocation13] sm:$0xf] }
 0x2f1   :  { %1895 = vmatprep.subr.bf16.mxu1 %v1894_v63  ;;  %v871_v63 = vld [vmem:[#allocation14 + $0x300] sm:$0xff]  ;;  %v612_v60 = vrot.slane %v2749_v59, %v2733_v29 }
 0x2f2   :  { %v1936_v3 = vpack.c.bf16 %v877_v0, %v871_v63  ;;  %v967_v63 = vld [vmem:[#allocation14 + $0x600] sm:$0xff]  ;;  %v973_v0 = vld [vmem:[#allocation14 + $0x630] sm:$0xff] }
 0x2f4   :  { %1897 = vmatpush1.bf16.msra.mxu1 %v1896_v4  ;;  %v1938_v4 = vpack.c.bf16 %v890_v2, %v884_v1 }
 0x2f5   :  { %1899 = vmatprep.subr.bf16.mxu1 %v1898_v5  ;;  %v883_v5 = vld [vmem:[#allocation14 + $0x360] sm:$0xff] }
 0x2f6   :  { %v1940_v9 = vpack.c.bf16 %v889_v6, %v883_v5  ;;  %v980_v5 = vld [vmem:[#allocation14 + $0x668] sm:$0xff] }
 0x2f8   :  { %1901 = vmatpush1.bf16.msra.mxu1 %v1900_v10  ;;  %v1942_v10 = vpack.c.bf16 %v902_v8, %v896_v7  ;;  %v986_v7 = vld [vmem:[#allocation14 + $0x698] sm:$0xff] }
 0x2f9   :  { %1903 = vmatprep.subr.bf16.mxu1 %v1902_v11  ;;  %v895_v11 = vld [vmem:[#allocation14 + $0x3c0] sm:$0xff]  ;;  %v982_v8 = vld [vmem:[#allocation14 + $0x678] sm:$0xff] }
 0x2fa   :  { %v1944_v15 = vpack.c.bf16 %v901_v12, %v895_v11  ;;  %v1968_v11 = vpack.c.bf16 %v973_v0, %v967_v63  ;;  %v1036_v63 = vld [vmem:[#allocation14 + $0x828] sm:$0xff] }
 0x2fb   :  { %765 = vmatmul.mubr.f32.vlgmr.msra.gmra.mrb[2].mxu1 %v542_v32  ;;  %v823_v32 = vld [vmem:[#allocation14 + $0x180] sm:$0xff] }
 0x2fc   :  { %1905 = vmatpush1.bf16.msra.mxu1 %v1904_v16  ;;  %v1920_v43 = vpack.c.bf16 %v829_v40, %v823_v32  ;;  %v1946_v16 = vpack.c.bf16 %v914_v14, %v908_v13  ;;  %v949_v32 = vld [vmem:[#allocation14 + $0x570] sm:$0xff]  ;;  %v956_v40 = vld [vmem:[#allocation14 + $0x5a8] sm:$0xff]  ;;  %v979_v13 = vld [vmem:[#allocation14 + $0x660] sm:$0xff] }
 0x2fd   :  { %1907 = vmatprep.subr.bf16.mxu1 %v1906_v17  ;;  %v907_v17 = vld [vmem:[#allocation14 + $0x420] sm:$0xff]  ;;  %v1962_v48 = vpack.c.bf16 %v962_v41, %v956_v40  ;;  %v985_v14 = vld [vmem:[#allocation14 + $0x690] sm:$0xff] }
 0x2fe   :  { %v1948_v21 = vpack.c.bf16 %v913_v18, %v907_v17  ;;  %v981_v18 = vld [vmem:[#allocation14 + $0x670] sm:$0xff]  ;;  %v1003_v41 = vld [vmem:[#allocation14 + $0x720] sm:$0xff] }
 0x300   :  { %1909 = vmatpush1.bf16.msra.mxu1 %v1908_v22  ;;  %v1950_v22 = vpack.c.bf16 %v926_v20, %v920_v19  ;;  %v987_v19 = vld [vmem:[#allocation14 + $0x6a0] sm:$0xff]  ;;  %v992_v20 = vld [vmem:[#allocation14 + $0x6c8] sm:$0xff] }
 0x301   :  { %1911 = vmatprep.subr.bf16.mxu1 %v1910_v23  ;;  %v919_v23 = vld [vmem:[#allocation14 + $0x480] sm:$0xff] }
 0x302   :  { %v1952_v30 = vpack.c.bf16 %v925_v24, %v919_v23  ;;  %v1000_v23 = vld [vmem:[#allocation14 + $0x708] sm:$0xff]  ;;  %v1972_v24 = vpack.c.bf16 %v985_v14, %v979_v13 }
 0x304   :  { %1913 = vmatpush1.bf16.msra.mxu1 %v1912_v33  ;;  %v1954_v33 = vpack.c.bf16 %v938_v26, %v932_v25  ;;  %v2100_v25 = vpack.c.bf16 %v987_v19, %v981_v18  ;;  %v991_v26 = vld [vmem:[#allocation14 + $0x6c0] sm:$0xff] }
 0x305   :  { %1915 = vmatprep.subr.bf16.mxu1 %v1914_v34  ;;  %v931_v34 = vld [vmem:[#allocation14 + $0x4e0] sm:$0xff] }
 0x306   :  { %v1956_v38 = vpack.c.bf16 %v937_v35, %v931_v34  ;;  %v993_v35 = vld [vmem:[#allocation14 + $0x6d0] sm:$0xff] }
 0x308   :  { %1917 = vmatpush1.bf16.msra.mxu1 %v1916_v39  ;;  %v1958_v39 = vpack.c.bf16 %v950_v37, %v944_v36  ;;  %v999_v36 = vld [vmem:[#allocation14 + $0x700] sm:$0xff]  ;;  %v1004_v37 = vld [vmem:[#allocation14 + $0x728] sm:$0xff] }
 0x309   :  { %1919 = vmatprep.subr.bf16.mxu1 %v1918_v27  ;;  %v943_v27 = vld [vmem:[#allocation14 + $0x540] sm:$0xff]  ;;  %v2104_v40 = vpack.c.bf16 %v999_v36, %v993_v35  ;;  %v1057_v35 = vld [vmem:[#allocation14 + $0x8d0] sm:$0xff] }
 0x30c   :  { %1921 = vmatpush1.bf16.msra.mxu1 %v1920_v43  ;;  %v964_v43 = vld [vmem:[#allocation14 + $0x5e8] sm:$0xff] }
 0x30d   :  { %1923 = vmatprep.subr.bf16.mxu1 %v1922_v44  ;;  %v1960_v44 = vpack.c.bf16 %v949_v32, %v943_v27  ;;  %v2090_v45 = vpack.c.bf16 %v964_v43, %v958_v42  ;;  %v1012_v27 = vld [vmem:[#allocation14 + $0x768] sm:$0xff]  ;;  %v1009_v42 = vld [vmem:[#allocation14 + $0x750] sm:$0xff] }
 0x30f   :  { %2091 = vmatprep.subr.bf16.mxu0 %v2090_v45  ;;  %v1005_v45 = vld [vmem:[#allocation14 + $0x730] sm:$0xff] }
 0x310   :  { %1925 = vmatpush1.bf16.msra.mxu1 %v1924_v49  ;;  %v955_v49 = vld [vmem:[#allocation14 + $0x5a0] sm:$0xff]  ;;  %2093 = vmatpush1.bf16.msra.mxu0 %v2092_v51  ;;  %v1980_v51 = vpack.c.bf16 %v1009_v42, %v1003_v41  ;;  %v2108_v53 = vpack.c.bf16 %v1011_v46, %v1005_v45  ;;  %v1066_v41 = vld [vmem:[#allocation14 + $0x918] sm:$0xff]  ;;  %v1072_v42 = vld [vmem:[#allocation14 + $0x948] sm:$0xff] }
 0x311   :  { %1927 = vmatprep.subr.bf16.mxu1 %v1926_v50  ;;  %v961_v50 = vld [vmem:[#allocation14 + $0x5d0] sm:$0xff]  ;;  %v1063_v46 = vld [vmem:[#allocation14 + $0x900] sm:$0xff] }
 0x314   :  { %1929 = vmatpush1.bf16.msra.mxu1 %v1928_v55  ;;  %v976_v55 = vld [vmem:[#allocation14 + $0x648] sm:$0xff] }
 0x315   :  { %1931 = vmatprep.subr.bf16.mxu1 %v1930_v56  ;;  %v1964_v56 = vpack.c.bf16 %v961_v50, %v955_v49  ;;  %v2094_v57 = vpack.c.bf16 %v976_v55, %v970_v54  ;;  %v1018_v49 = vld [vmem:[#allocation14 + $0x798] sm:$0xff]  ;;  %v1024_v50 = vld [vmem:[#allocation14 + $0x7c8] sm:$0xff]  ;;  %v1021_v54 = vld [vmem:[#allocation14 + $0x7b0] sm:$0xff] }
 0x316   :  { %v1984_v0 = vpack.c.bf16 %v1021_v54, %v1015_v52  ;;  %v1076_v52 = vld [vmem:[#allocation14 + $0x968] sm:$0xff] }
 0x317   :  { %2095 = vmatprep.subr.bf16.mxu0 %v2094_v57  ;;  %v1017_v57 = vld [vmem:[#allocation14 + $0x790] sm:$0xff] }
 0x318   :  { %1933 = vmatpush1.bf16.msra.mxu1 %v1932_v61  ;;  %v616_v61 = vrot.slane %v2749_v59, %v2736_v31 }
 0x319   :  { %1935 = vmatprep.subr.bf16.mxu1 %v1934_v62 }
 0x31c   :  { %1937 = vmatpush1.bf16.msra.mxu1 %v1936_v3  ;;  %v969_v3 = vld [vmem:[#allocation14 + $0x610] sm:$0xff] }
 0x31d   :  { %1939 = vmatprep.subr.bf16.mxu1 %v1938_v4  ;;  %v975_v4 = vld [vmem:[#allocation14 + $0x640] sm:$0xff] }
 0x31e   :  { %v2096_v12 = vpack.c.bf16 %v975_v4, %v969_v3  ;;  %v1033_v3 = vld [vmem:[#allocation14 + $0x810] sm:$0xff] }
 0x320   :  { %1941 = vmatpush1.bf16.msra.mxu1 %v1940_v9  ;;  %v988_v9 = vld [vmem:[#allocation14 + $0x6a8] sm:$0xff] }
 0x321   :  { %1943 = vmatprep.subr.bf16.mxu1 %v1942_v10  ;;  %v2098_v17 = vpack.c.bf16 %v988_v9, %v982_v8  ;;  %v1040_v8 = vld [vmem:[#allocation14 + $0x848] sm:$0xff]  ;;  %v1046_v9 = vld [vmem:[#allocation14 + $0x878] sm:$0xff] }
 0x322   :  { %v1990_v18 = vpack.c.bf16 %v1046_v9, %v1040_v8 }
 0x324   :  { %1945 = vmatpush1.bf16.msra.mxu1 %v1944_v15 }
 0x325   :  { %1947 = vmatprep.subr.bf16.mxu1 %v1946_v16  ;;  %v1970_v16 = vpack.c.bf16 %v986_v7, %v980_v5  ;;  %v1035_v7 = vld [vmem:[#allocation14 + $0x820] sm:$0xff] }
 0x328   :  { %1949 = vmatpush1.bf16.msra.mxu1 %v1948_v21  ;;  %v998_v21 = vld [vmem:[#allocation14 + $0x6f8] sm:$0xff] }
 0x329   :  { %1951 = vmatprep.subr.bf16.mxu1 %v1950_v22  ;;  %v994_v22 = vld [vmem:[#allocation14 + $0x6d8] sm:$0xff] }
 0x32a   :  { %v2102_v34 = vpack.c.bf16 %v1000_v23, %v994_v22  ;;  %v1052_v22 = vld [vmem:[#allocation14 + $0x8a8] sm:$0xff]  ;;  %v623_v23 = vsub.s32 3, %v2730_v28 }
 0x32c   :  { %1953 = vmatpush1.bf16.msra.mxu1 %v1952_v30  ;;  %v997_v30 = vld [vmem:[#allocation14 + $0x6f0] sm:$0xff] }
 0x32d   :  { %1955 = vmatprep.subr.bf16.mxu1 %v1954_v33  ;;  %v1974_v33 = vpack.c.bf16 %v998_v21, %v992_v20  ;;  %v1976_v32 = vpack.c.bf16 %v997_v30, %v991_v26  ;;  %v1041_v20 = vld [vmem:[#allocation14 + $0x850] sm:$0xff]  ;;  %v1047_v21 = vld [vmem:[#allocation14 + $0x880] sm:$0xff]  ;;  %v1060_v26 = vld [vmem:[#allocation14 + $0x8e8] sm:$0xff] }
 0x330   :  { %1957 = vmatpush1.bf16.msra.mxu1 %v1956_v38  ;;  %v1010_v38 = vld [vmem:[#allocation14 + $0x758] sm:$0xff] }
 0x331   :  { %1959 = vmatprep.subr.bf16.mxu1 %v1958_v39  ;;  %v1006_v39 = vld [vmem:[#allocation14 + $0x738] sm:$0xff]  ;;  %v1978_v43 = vpack.c.bf16 %v1010_v38, %v1004_v37  ;;  %v1053_v38 = vld [vmem:[#allocation14 + $0x8b0] sm:$0xff] }
 0x334   :  { %1961 = vmatpush1.bf16.msra.mxu1 %v1960_v44  ;;  %v2106_v44 = vpack.c.bf16 %v1012_v27, %v1006_v39  ;;  %v1059_v39 = vld [vmem:[#allocation14 + $0x8e0] sm:$0xff]  ;;  %v1064_v27 = vld [vmem:[#allocation14 + $0x908] sm:$0xff] }
 0x335   :  { %1963 = vmatprep.subr.bf16.mxu1 %v1962_v48  ;;  %v1022_v48 = vld [vmem:[#allocation14 + $0x7b8] sm:$0xff]  ;;  %v2124_v45 = vpack.c.bf16 %v1059_v39, %v1053_v38  ;;  %v1120_v39 = vld [vmem:[#allocation14 + $0xac8] sm:$0xff] }
 0x336   :  { %v1982_v55 = vpack.c.bf16 %v1022_v48, %v1016_v47  ;;  %v1069_v47 = vld [vmem:[#allocation14 + $0x930] sm:$0xff]  ;;  %v1114_v38 = vld [vmem:[#allocation14 + $0xa98] sm:$0xff] }
 0x338   :  { %1965 = vmatpush1.bf16.msra.mxu1 %v1964_v56  ;;  %v2110_v56 = vpack.c.bf16 %v1024_v50, %v1018_v49  ;;  %v2126_v50 = vpack.c.bf16 %v1072_v42, %v1066_v41  ;;  %v1117_v41 = vld [vmem:[#allocation14 + $0xab0] sm:$0xff] }
 0x339   :  { %1967 = vmatprep.subr.bf16.mxu1 %v1966_v58  ;;  %v1023_v58 = vld [vmem:[#allocation14 + $0x7c0] sm:$0xff] }
 0x3ae   :  { %v695_v62 = vpop.f32.mrb[0].mxu1 }
 0x3af   :  { %v696_v1 = vadd.f32 %v695_v62, %v612_v60  ;;  %v697_v2 = vpop.f32.mrb[1].mxu1  ;;  %v1028_v60 = vld [vmem:[#allocation14 + $0x7e8] sm:$0xff]  ;;  %v1030_v62 = vld [vmem:[#allocation14 + $0x7f8] sm:$0xff] }
 0x3b0   :  { %v698_v6 = vadd.f32 %v697_v2, %v616_v61  ;;  %v1034_v61 = vld [vmem:[#allocation14 + $0x818] sm:$0xff]  ;;  %v1027_v2 = vld [vmem:[#allocation14 + $0x7e0] sm:$0xff]  ;;  %v2114_v5 = vpack.c.bf16 %v1036_v63, %v1030_v62  ;;  %v1081_v63 = vld [vmem:[#allocation14 + $0x990] sm:$0xff] }
 0x3b1   :  { %v2757_v15 = vmax.f32 %v696_v1, 0.0  ;;  %v2112_v1 = vpack.c.bf16 %v1023_v58, %v1017_v57  ;;  %v1986_v4 = vpack.c.bf16 %v1034_v61, %v1028_v60  ;;  %v1988_v13 = vpack.c.bf16 %v1033_v3, %v1027_v2  ;;  %v1084_v57 = vld [vmem:[#allocation14 + $0x9a8] sm:$0xff]  ;;  %v1075_v62 = vld [vmem:[#allocation14 + $0x960] sm:$0xff]  ;;  %v1077_v2 = vld [vmem:[#allocation14 + $0x970] sm:$0xff] }
 0x3b2   :  { %v2755_v10 = vmax.f32 %v698_v6, 0.0  ;;  %v1029_v6 = vld [vmem:[#allocation14 + $0x7f0] sm:$0xff]  ;;  %v2000_v60 = vpack.c.bf16 %v1069_v47, %v1063_v46  ;;  %v1083_v3 = vld [vmem:[#allocation14 + $0x9a0] sm:$0xff]  ;;  %v2004_v8 = vpack.c.bf16 %v1081_v63, %v1075_v62  ;;  %v1124_v47 = vld [vmem:[#allocation14 + $0xae8] sm:$0xff] }
 0x3b3   :  { %v2116_v14 = vpack.c.bf16 %v1035_v7, %v1029_v6  ;;  %v1090_v6 = vld [vmem:[#allocation14 + $0x9d8] sm:$0xff]  ;;  %v1096_v7 = vld [vmem:[#allocation14 + $0xa08] sm:$0xff]  ;;  %v2132_v9 = vpack.c.bf16 %v1083_v3, %v1077_v2  ;;  %v1119_v46 = vld [vmem:[#allocation14 + $0xac0] sm:$0xff] }
 0x3b4   :  { %1255 = vmatprep.mubr.f32.mxu1 %v2755_v10  ;;  %1397 = vmatprep.mubr.f32.mxu0 %v2755_v10  ;;  %v1142_v62 = vld [vmem:[#allocation14 + $0xb78] sm:$0xff]  ;;  %v1135_v3 = vld [vmem:[#allocation14 + $0xb40] sm:$0xff] }
 0x3b5   :  { %1256 = vmatmul.mubr.f32.vlgmr.msra.gmra.mrb[4].mxu1 %v2757_v15  ;;  %1398 = vmatmul.mubr.f32.vlgmr.msra.gmra.mrb[4].mxu0 %v2757_v15  ;;  %v1138_v63 = vld [vmem:[#allocation14 + $0xb58] sm:$0xff] }
 0x3b6   :  { %1969 = vmatpush1.bf16.msra.mxu1 %v1968_v11  ;;  %2097 = vmatpush1.bf16.msra.mxu0 %v2096_v12  ;;  %v1042_v11 = vld [vmem:[#allocation14 + $0x858] sm:$0xff]  ;;  %v1048_v12 = vld [vmem:[#allocation14 + $0x888] sm:$0xff] }
 0x3b7   :  { %1971 = vmatprep.subr.bf16.mxu1 %v1970_v16  ;;  %2099 = vmatprep.subr.bf16.mxu0 %v2098_v17  ;;  %v1039_v16 = vld [vmem:[#allocation14 + $0x840] sm:$0xff]  ;;  %v1045_v17 = vld [vmem:[#allocation14 + $0x870] sm:$0xff]  ;;  %v2118_v19 = vpack.c.bf16 %v1048_v12, %v1042_v11 }
 0x3b8   :  { %v1992_v30 = vpack.c.bf16 %v1045_v17, %v1039_v16  ;;  %v1087_v11 = vld [vmem:[#allocation14 + $0x9c0] sm:$0xff]  ;;  %v1093_v12 = vld [vmem:[#allocation14 + $0x9f0] sm:$0xff] }
 0x3b9   :  { %v1089_v16 = vld [vmem:[#allocation14 + $0x9d0] sm:$0xff]  ;;  %v1095_v17 = vld [vmem:[#allocation14 + $0xa00] sm:$0xff] }
 0x3ba   :  { %1973 = vmatpush1.bf16.msra.mxu1 %v1972_v24  ;;  %2101 = vmatpush1.bf16.msra.mxu0 %v2100_v25  ;;  %v1058_v24 = vld [vmem:[#allocation14 + $0x8d8] sm:$0xff] }
 0x3bb   :  { %1975 = vmatprep.subr.bf16.mxu1 %v1974_v33  ;;  %2103 = vmatprep.subr.bf16.mxu0 %v2102_v34  ;;  %v1054_v25 = vld [vmem:[#allocation14 + $0x8b8] sm:$0xff]  ;;  %v2120_v33 = vpack.c.bf16 %v1047_v21, %v1041_v20  ;;  %v1051_v34 = vld [vmem:[#allocation14 + $0x8a0] sm:$0xff]  ;;  %v1994_v36 = vpack.c.bf16 %v1058_v24, %v1052_v22  ;;  %v1108_v21 = vld [vmem:[#allocation14 + $0xa68] sm:$0xff]  ;;  %v2008_v22 = vpack.c.bf16 %v1093_v12, %v1087_v11 }
 0x3bc   :  { %v2122_v37 = vpack.c.bf16 %v1060_v26, %v1054_v25  ;;  %v1102_v20 = vld [vmem:[#allocation14 + $0xa38] sm:$0xff]  ;;  %v2136_v24 = vpack.c.bf16 %v1095_v17, %v1089_v16  ;;  %v1099_v25 = vld [vmem:[#allocation14 + $0xa20] sm:$0xff]  ;;  %v1105_v26 = vld [vmem:[#allocation14 + $0xa50] sm:$0xff] }
 0x3bd   :  { %v1148_v11 = vld [vmem:[#allocation14 + $0xba8] sm:$0xff]  ;;  %v1154_v12 = vld [vmem:[#allocation14 + $0xbd8] sm:$0xff] }
 0x3be   :  { %1977 = vmatpush1.bf16.msra.mxu1 %v1976_v32  ;;  %2105 = vmatpush1.bf16.msra.mxu0 %v2104_v40  ;;  %v624_v32 = vrot.slane %v2749_v59, %v623_v23  ;;  %v1070_v40 = vld [vmem:[#allocation14 + $0x938] sm:$0xff] }
 0x3bf   :  { %1979 = vmatprep.subr.bf16.mxu1 %v1978_v43  ;;  %2107 = vmatprep.subr.bf16.mxu0 %v2106_v44  ;;  %v1996_v44 = vpack.c.bf16 %v1057_v35, %v1051_v34  ;;  %v1998_v49 = vpack.c.bf16 %v1070_v40, %v1064_v27  ;;  %v1101_v34 = vld [vmem:[#allocation14 + $0xa30] sm:$0xff]  ;;  %v1107_v35 = vld [vmem:[#allocation14 + $0xa60] sm:$0xff]  ;;  %v2012_v27 = vpack.c.bf16 %v1105_v26, %v1099_v25  ;;  %v780_v26 = vld [vmem:[#allocation14 + $0x28] sm:$0xff] }
 0x3c0   :  { %v1111_v40 = vld [vmem:[#allocation14 + $0xa80] sm:$0xff] }
 0x3c1   :  { %v1155_v25 = vld [vmem:[#allocation14 + $0xbe0] sm:$0xff] }
 0x3c2   :  { %1981 = vmatpush1.bf16.msra.mxu1 %v1980_v51  ;;  %2109 = vmatpush1.bf16.msra.mxu0 %v2108_v53  ;;  %v1065_v51 = vld [vmem:[#allocation14 + $0x910] sm:$0xff]  ;;  %v1071_v53 = vld [vmem:[#allocation14 + $0x940] sm:$0xff] }
 0x3c3   :  { %1983 = vmatprep.subr.bf16.mxu1 %v1982_v55  ;;  %2111 = vmatprep.subr.bf16.mxu0 %v2110_v56  ;;  %v1082_v55 = vld [vmem:[#allocation14 + $0x998] sm:$0xff]  ;;  %v2128_v61 = vpack.c.bf16 %v1071_v53, %v1065_v51  ;;  %v2016_v51 = vpack.c.bf16 %v1117_v41, %v1111_v40  ;;  %v791_v41 = vld [vmem:[#allocation14 + $0x80] sm:$0xff] }
 0x3c4   :  { %v1078_v56 = vld [vmem:[#allocation14 + $0x978] sm:$0xff] }
 0x3c6   :  { %1985 = vmatpush1.bf16.msra.mxu1 %v1984_v0  ;;  %2113 = vmatpush1.bf16.msra.mxu0 %v2112_v1  ;;  %v2002_v0 = vpack.c.bf16 %v1082_v55, %v1076_v52  ;;  %v2130_v1 = vpack.c.bf16 %v1084_v57, %v1078_v56  ;;  %v1123_v52 = vld [vmem:[#allocation14 + $0xae0] sm:$0xff]  ;;  %v1125_v57 = vld [vmem:[#allocation14 + $0xaf0] sm:$0xff] }
 0x3c7   :  { %1987 = vmatprep.subr.bf16.mxu1 %v1986_v4  ;;  %2115 = vmatprep.subr.bf16.mxu0 %v2114_v5  ;;  %v1088_v4 = vld [vmem:[#allocation14 + $0x9c8] sm:$0xff]  ;;  %v1094_v5 = vld [vmem:[#allocation14 + $0x9f8] sm:$0xff] }
 0x3ca   :  { %1989 = vmatpush1.bf16.msra.mxu1 %v1988_v13  ;;  %2117 = vmatpush1.bf16.msra.mxu0 %v2116_v14  ;;  %v2006_v13 = vpack.c.bf16 %v1094_v5, %v1088_v4  ;;  %v2134_v14 = vpack.c.bf16 %v1096_v7, %v1090_v6  ;;  %v1141_v4 = vld [vmem:[#allocation14 + $0xb70] sm:$0xff]  ;;  %v619_v5 = vsub.s32 2, %v2730_v28 }
 0x3cb   :  { %1991 = vmatprep.subr.bf16.mxu1 %v1990_v18  ;;  %2119 = vmatprep.subr.bf16.mxu0 %v2118_v19  ;;  %v1100_v18 = vld [vmem:[#allocation14 + $0xa28] sm:$0xff]  ;;  %v1106_v19 = vld [vmem:[#allocation14 + $0xa58] sm:$0xff]  ;;  %v2024_v16 = vpack.c.bf16 %v1141_v4, %v1135_v3  ;;  %v845_v3 = vld [vmem:[#allocation14 + $0x230] sm:$0xff] }
 0x3cc   :  { %v852_v4 = vld [vmem:[#allocation14 + $0x268] sm:$0xff] }
 0x3ce   :  { %v2767_v43 = vpop.f32.mrb[2].mxu1  ;;  %1993 = vmatpush1.bf16.msra.mxu1 %v1992_v30  ;;  %2121 = vmatpush1.bf16.msra.mxu0 %v2120_v33  ;;  %v2010_v30 = vpack.c.bf16 %v1106_v19, %v1100_v18  ;;  %v2138_v33 = vpack.c.bf16 %v1108_v21, %v1102_v20  ;;  %v1147_v18 = vld [vmem:[#allocation14 + $0xba0] sm:$0xff]  ;;  %v620_v19 = vrot.slane %v2749_v59, %v619_v5  ;;  %v785_v59 = vld [vmem:[#allocation14 + $0x50] sm:$0xff] }
 0x3cf   :  { %v768_v48 = vpop.f32.mrb[3].mxu1  ;;  %1995 = vmatprep.subr.bf16.mxu1 %v1994_v36  ;;  %2123 = vmatprep.subr.bf16.mxu0 %v2122_v37  ;;  %v1112_v36 = vld [vmem:[#allocation14 + $0xa88] sm:$0xff]  ;;  %v1118_v37 = vld [vmem:[#allocation14 + $0xab8] sm:$0xff]  ;;  %v2026_v20 = vpack.c.bf16 %v1154_v12, %v1148_v11  ;;  %v857_v11 = vld [vmem:[#allocation14 + $0x290] sm:$0xff] }
 0x3d0   :  { %v769_v54 = vadd.f32 %v768_v48, %v624_v32  ;;  %v2140_v32 = vpack.c.bf16 %v1107_v35, %v1101_v34  ;;  %v2014_v42 = vpack.c.bf16 %v1118_v37, %v1112_v36  ;;  %v1130_v48 = vld [vmem:[#allocation14 + $0xb18] sm:$0xff]  ;;  %v767_v35 = vadd.f32 %v2767_v43, %v620_v19  ;;  %v779_v37 = vld [vmem:[#allocation14 + $0x20] sm:$0xff]  ;;  %v864_v12 = vld [vmem:[#allocation14 + $0x2c8] sm:$0xff] }
 0x3d1   :  { %v2018_v55 = vpack.c.bf16 %v1130_v48, %v1124_v47  ;;  %v803_v47 = vld [vmem:[#allocation14 + $0xe0] sm:$0xff]  ;;  %v809_v48 = vld [vmem:[#allocation14 + $0x110] sm:$0xff]  ;;  %v876_v19 = vld [vmem:[#allocation14 + $0x328] sm:$0xff] }
 0x3d2   :  { %v2769_v58 = vmax.f32 %v769_v54, 0.0  ;;  %1997 = vmatpush1.bf16.msra.mxu1 %v1996_v44  ;;  %2125 = vmatpush1.bf16.msra.mxu0 %v2124_v45  ;;  %v2142_v44 = vpack.c.bf16 %v1120_v39, %v1114_v38  ;;  %v1113_v45 = vld [vmem:[#allocation14 + $0xa90] sm:$0xff]  ;;  %v792_v38 = vld [vmem:[#allocation14 + $0x88] sm:$0xff]  ;;  %v798_v39 = vld [vmem:[#allocation14 + $0xb8] sm:$0xff] }
 0x3d3   :  { %1999 = vmatprep.subr.bf16.mxu1 %v1998_v49  ;;  %2127 = vmatprep.subr.bf16.mxu0 %v2126_v50  ;;  %v1126_v49 = vld [vmem:[#allocation14 + $0xaf8] sm:$0xff]  ;;  %v1132_v50 = vld [vmem:[#allocation14 + $0xb28] sm:$0xff]  ;;  %v2144_v53 = vpack.c.bf16 %v1119_v46, %v1113_v45  ;;  %v1129_v54 = vld [vmem:[#allocation14 + $0xb10] sm:$0xff]  ;;  %v2162_v40 = vpack.c.bf16 %v798_v39, %v792_v38 }
 0x3d4   :  { %1326 = vmatprep.mubr.f32.mxu1 %v2769_v58  ;;  %1468 = vmatprep.mubr.f32.mxu0 %v2769_v58  ;;  %v2146_v56 = vpack.c.bf16 %v1132_v50, %v1126_v49  ;;  %v810_v45 = vld [vmem:[#allocation14 + $0x118] sm:$0xff]  ;;  %v816_v49 = vld [vmem:[#allocation14 + $0x148] sm:$0xff] }
 0x3d5   :  { %v822_v50 = vld [vmem:[#allocation14 + $0x178] sm:$0xff] }
 0x3d6   :  { %2001 = vmatpush1.bf16.msra.mxu1 %v2000_v60  ;;  %2129 = vmatpush1.bf16.msra.mxu0 %v2128_v61  ;;  %v1131_v60 = vld [vmem:[#allocation14 + $0xb20] sm:$0xff]  ;;  %v1136_v61 = vld [vmem:[#allocation14 + $0xb48] sm:$0xff] }
 0x3d7   :  { %2003 = vmatprep.subr.bf16.mxu1 %v2002_v0  ;;  %2131 = vmatprep.subr.bf16.mxu0 %v2130_v1  ;;  %v1144_v0 = vld [vmem:[#allocation14 + $0xb88] sm:$0xff]  ;;  %v2020_v1 = vpack.c.bf16 %v1129_v54, %v1123_v52  ;;  %v2148_v2 = vpack.c.bf16 %v1131_v60, %v1125_v57  ;;  %v2022_v6 = vpack.c.bf16 %v1142_v62, %v1136_v61  ;;  %v815_v52 = vld [vmem:[#allocation14 + $0x140] sm:$0xff]  ;;  %v821_v54 = vld [vmem:[#allocation14 + $0x170] sm:$0xff] }
 0x3d8   :  { %v2150_v7 = vpack.c.bf16 %v1144_v0, %v1138_v63  ;;  %v2172_v57 = vpack.c.bf16 %v821_v54, %v815_v52  ;;  %v833_v61 = vld [vmem:[#allocation14 + $0x1d0] sm:$0xff]  ;;  %v840_v62 = vld [vmem:[#allocation14 + $0x208] sm:$0xff]  ;;  %v846_v63 = vld [vmem:[#allocation14 + $0x238] sm:$0xff] }
 0x3d9   :  { %v936_v52 = vld [vmem:[#allocation14 + $0x508] sm:$0xff]  ;;  %v942_v54 = vld [vmem:[#allocation14 + $0x538] sm:$0xff] }
 0x3da   :  { %2005 = vmatpush1.bf16.msra.mxu1 %v2004_v8  ;;  %2133 = vmatpush1.bf16.msra.mxu0 %v2132_v9  ;;  %v1137_v8 = vld [vmem:[#allocation14 + $0xb50] sm:$0xff]  ;;  %v1143_v9 = vld [vmem:[#allocation14 + $0xb80] sm:$0xff] }
 0x3db   :  { %2007 = vmatprep.subr.bf16.mxu1 %v2006_v13  ;;  %2135 = vmatprep.subr.bf16.mxu0 %v2134_v14  ;;  %v1150_v13 = vld [vmem:[#allocation14 + $0xbb8] sm:$0xff]  ;;  %v1156_v14 = vld [vmem:[#allocation14 + $0xbe8] sm:$0xff]  ;;  %v2152_v17 = vpack.c.bf16 %v1143_v9, %v1137_v8  ;;  %v851_v9 = vld [vmem:[#allocation14 + $0x260] sm:$0xff] }
 0x3dc   :  { %v2154_v21 = vpack.c.bf16 %v1156_v14, %v1150_v13  ;;  %v870_v13 = vld [vmem:[#allocation14 + $0x2f8] sm:$0xff]  ;;  %v2184_v14 = vpack.c.bf16 %v857_v11, %v851_v9  ;;  %v972_v9 = vld [vmem:[#allocation14 + $0x628] sm:$0xff] }
 0x3dd   :  { %v978_v11 = vld [vmem:[#allocation14 + $0x658] sm:$0xff] }
 0x3de   :  { %2009 = vmatpush1.bf16.msra.mxu1 %v2008_v22  ;;  %2137 = vmatpush1.bf16.msra.mxu0 %v2136_v24  ;;  %v1153_v22 = vld [vmem:[#allocation14 + $0xbd0] sm:$0xff] }
 0x3df   :  { %2011 = vmatprep.subr.bf16.mxu1 %v2010_v30  ;;  %2139 = vmatprep.subr.bf16.mxu0 %v2138_v33  ;;  %v1149_v24 = vld [vmem:[#allocation14 + $0xbb0] sm:$0xff]  ;;  %v786_v30 = vld [vmem:[#allocation14 + $0x58] sm:$0xff]  ;;  %v2028_v33 = vpack.c.bf16 %v1153_v22, %v1147_v18 }
 0x3e0   :  { %v2156_v34 = vpack.c.bf16 %v1155_v25, %v1149_v24  ;;  %v2158_v36 = vpack.c.bf16 %v786_v30, %v780_v26  ;;  %v869_v18 = vld [vmem:[#allocation14 + $0x2f0] sm:$0xff]  ;;  %v875_v24 = vld [vmem:[#allocation14 + $0x320] sm:$0xff]  ;;  %v888_v26 = vld [vmem:[#allocation14 + $0x388] sm:$0xff] }
 0x3e1   :  { %v881_v25 = vld [vmem:[#allocation14 + $0x350] sm:$0xff]  ;;  %v894_v30 = vld [vmem:[#allocation14 + $0x3b8] sm:$0xff] }
 0x3e2   :  { %2013 = vmatpush1.bf16.msra.mxu1 %v2012_v27  ;;  %2141 = vmatpush1.bf16.msra.mxu0 %v2140_v32  ;;  %v2160_v27 = vpack.c.bf16 %v785_v59, %v779_v37  ;;  %v2778_v32 = vmax.f32 %v767_v35, 0.0  ;;  %v887_v35 = vld [vmem:[#allocation14 + $0x380] sm:$0xff]  ;;  %v900_v37 = vld [vmem:[#allocation14 + $0x3e8] sm:$0xff]  ;;  %v906_v59 = vld [vmem:[#allocation14 + $0x418] sm:$0xff] }
 0x3e3   :  { %2015 = vmatprep.subr.bf16.mxu1 %v2014_v42  ;;  %2143 = vmatprep.subr.bf16.mxu0 %v2142_v44  ;;  %v797_v42 = vld [vmem:[#allocation14 + $0xb0] sm:$0xff]  ;;  %v804_v44 = vld [vmem:[#allocation14 + $0xe8] sm:$0xff]  ;;  %v2198_v39 = vpack.c.bf16 %v906_v59, %v900_v37 }
 0x3e4   :  { %v2164_v43 = vpack.c.bf16 %v797_v42, %v791_v41  ;;  %v2166_v46 = vpack.c.bf16 %v810_v45, %v804_v44  ;;  %v912_v41 = vld [vmem:[#allocation14 + $0x448] sm:$0xff]  ;;  %v918_v42 = vld [vmem:[#allocation14 + $0x478] sm:$0xff] }
 0x3e5   :  { %v2202_v45 = vpack.c.bf16 %v918_v42, %v912_v41  ;;  %v1025_v42 = vld [vmem:[#allocation14 + $0x7d0] sm:$0xff] }
 0x3e6   :  { %2017 = vmatpush1.bf16.msra.mxu1 %v2016_v51  ;;  %2145 = vmatpush1.bf16.msra.mxu0 %v2144_v53  ;;  %v2168_v51 = vpack.c.bf16 %v809_v48, %v803_v47  ;;  %v2170_v53 = vpack.c.bf16 %v822_v50, %v816_v49  ;;  %v924_v47 = vld [vmem:[#allocation14 + $0x4a8] sm:$0xff]  ;;  %v930_v48 = vld [vmem:[#allocation14 + $0x4d8] sm:$0xff] }
 0x3e7   :  { %2019 = vmatprep.subr.bf16.mxu1 %v2018_v55  ;;  %2147 = vmatprep.subr.bf16.mxu0 %v2146_v56  ;;  %v828_v55 = vld [vmem:[#allocation14 + $0x1a8] sm:$0xff]  ;;  %v834_v56 = vld [vmem:[#allocation14 + $0x1d8] sm:$0xff]  ;;  %v2206_v50 = vpack.c.bf16 %v930_v48, %v924_v47  ;;  %v1031_v47 = vld [vmem:[#allocation14 + $0x800] sm:$0xff] }
 0x3e8   :  { %v2174_v60 = vpack.c.bf16 %v834_v56, %v828_v55  ;;  %v2210_v56 = vpack.c.bf16 %v942_v54, %v936_v52  ;;  %v1037_v48 = vld [vmem:[#allocation14 + $0x830] sm:$0xff]  ;;  %v1043_v52 = vld [vmem:[#allocation14 + $0x860] sm:$0xff] }
 0x3e9   :  { %v1049_v54 = vld [vmem:[#allocation14 + $0x890] sm:$0xff] }
 0x3ea   :  { %2021 = vmatpush1.bf16.msra.mxu1 %v2020_v1  ;;  %2149 = vmatpush1.bf16.msra.mxu0 %v2148_v2  ;;  %v2178_v1 = vpack.c.bf16 %v846_v63, %v840_v62  ;;  %v839_v2 = vld [vmem:[#allocation14 + $0x200] sm:$0xff] }
 0x3eb   :  { %2023 = vmatprep.subr.bf16.mxu1 %v2022_v6  ;;  %2151 = vmatprep.subr.bf16.mxu0 %v2150_v7  ;;  %v858_v6 = vld [vmem:[#allocation14 + $0x298] sm:$0xff]  ;;  %v2180_v7 = vpack.c.bf16 %v845_v3, %v839_v2  ;;  %v960_v2 = vld [vmem:[#allocation14 + $0x5c8] sm:$0xff] }
 0x3ec   :  { %v2182_v8 = vpack.c.bf16 %v858_v6, %v852_v4  ;;  %v966_v3 = vld [vmem:[#allocation14 + $0x5f8] sm:$0xff] }
 0x3ed   :  { %v2218_v6 = vpack.c.bf16 %v966_v3, %v960_v2  ;;  %v1067_v2 = vld [vmem:[#allocation14 + $0x920] sm:$0xff]  ;;  %v1073_v3 = vld [vmem:[#allocation14 + $0x950] sm:$0xff] }
 0x3ee   :  { %2025 = vmatpush1.bf16.msra.mxu1 %v2024_v16  ;;  %2153 = vmatpush1.bf16.msra.mxu0 %v2152_v17  ;;  %v2186_v16 = vpack.c.bf16 %v870_v13, %v864_v12  ;;  %v863_v17 = vld [vmem:[#allocation14 + $0x2c0] sm:$0xff]  ;;  %v2222_v13 = vpack.c.bf16 %v978_v11, %v972_v9  ;;  %v1085_v11 = vld [vmem:[#allocation14 + $0x9b0] sm:$0xff] }
 0x3ef   :  { %2027 = vmatprep.subr.bf16.mxu1 %v2026_v20  ;;  %2155 = vmatprep.subr.bf16.mxu0 %v2154_v21  ;;  %v882_v20 = vld [vmem:[#allocation14 + $0x358] sm:$0xff]  ;;  %v2188_v21 = vpack.c.bf16 %v869_v18, %v863_v17  ;;  %v984_v17 = vld [vmem:[#allocation14 + $0x688] sm:$0xff]  ;;  %v1079_v9 = vld [vmem:[#allocation14 + $0x980] sm:$0xff] }
 0x3f0   :  { %v2190_v22 = vpack.c.bf16 %v882_v20, %v876_v19  ;;  %v990_v18 = vld [vmem:[#allocation14 + $0x6b8] sm:$0xff] }
 0x3f1   :  { %v2226_v20 = vpack.c.bf16 %v990_v18, %v984_v17  ;;  %v1091_v17 = vld [vmem:[#allocation14 + $0x9e0] sm:$0xff]  ;;  %v1097_v18 = vld [vmem:[#allocation14 + $0xa10] sm:$0xff] }
 0x3f2   :  { %2029 = vmatpush1.bf16.msra.mxu1 %v2028_v33  ;;  %2157 = vmatpush1.bf16.msra.mxu0 %v2156_v34  ;;  %v2192_v33 = vpack.c.bf16 %v881_v25, %v875_v24  ;;  %v2194_v34 = vpack.c.bf16 %v894_v30, %v888_v26  ;;  %v996_v24 = vld [vmem:[#allocation14 + $0x6e8] sm:$0xff]  ;;  %v1002_v25 = vld [vmem:[#allocation14 + $0x718] sm:$0xff] }
 0x3f3   :  { %2159 = vmatprep.subr.bf16.mxu1 %v2158_v36  ;;  %v893_v36 = vld [vmem:[#allocation14 + $0x3b0] sm:$0xff]  ;;  %v2230_v30 = vpack.c.bf16 %v1002_v25, %v996_v24  ;;  %v1103_v24 = vld [vmem:[#allocation14 + $0xa40] sm:$0xff] }
 0x3f4   :  { %v2196_v38 = vpack.c.bf16 %v893_v36, %v887_v35  ;;  %v1008_v35 = vld [vmem:[#allocation14 + $0x748] sm:$0xff]  ;;  %v1014_v36 = vld [vmem:[#allocation14 + $0x778] sm:$0xff]  ;;  %v1109_v25 = vld [vmem:[#allocation14 + $0xa70] sm:$0xff] }
 0x3f5   :  { %1327 = vmatmul.mubr.f32.vlgmr.msra.gmra.mrb[4].mxu1 %v2778_v32  ;;  %1469 = vmatmul.mubr.f32.vlgmr.msra.gmra.mrb[4].mxu0 %v2778_v32  ;;  %v2234_v59 = vpack.c.bf16 %v1014_v36, %v1008_v35  ;;  %v1115_v35 = vld [vmem:[#allocation14 + $0xaa0] sm:$0xff]  ;;  %v1121_v36 = vld [vmem:[#allocation14 + $0xad0] sm:$0xff] }
 0x3f6   :  { %2161 = vmatpush1.bf16.msra.mxu1 %v2160_v27  ;;  %1539 = vmatprep.mubr.f32.mxu1 %v2755_v10  ;;  %v827_v10 = vld [vmem:[#allocation14 + $0x1a0] sm:$0xff] }
 0x3f7   :  { %2163 = vmatprep.subr.bf16.mxu1 %v2162_v40  ;;  %v2176_v0 = vpack.c.bf16 %v833_v61, %v827_v10  ;;  %v899_v27 = vld [vmem:[#allocation14 + $0x3e0] sm:$0xff]  ;;  %v905_v40 = vld [vmem:[#allocation14 + $0x410] sm:$0xff]  ;;  %v948_v10 = vld [vmem:[#allocation14 + $0x568] sm:$0xff] }
 0x3f8   :  { %v2200_v44 = vpack.c.bf16 %v905_v40, %v899_v27  ;;  %v954_v61 = vld [vmem:[#allocation14 + $0x598] sm:$0xff]  ;;  %v1020_v27 = vld [vmem:[#allocation14 + $0x7a8] sm:$0xff] }
 0x3f9   :  { %v2214_v63 = vpack.c.bf16 %v954_v61, %v948_v10  ;;  %v1026_v40 = vld [vmem:[#allocation14 + $0x7d8] sm:$0xff]  ;;  %v1055_v10 = vld [vmem:[#allocation14 + $0x8c0] sm:$0xff]  ;;  %v1061_v61 = vld [vmem:[#allocation14 + $0x8f0] sm:$0xff] }
 0x3fa   :  { %2165 = vmatpush1.bf16.msra.mxu1 %v2164_v43  ;;  %v911_v43 = vld [vmem:[#allocation14 + $0x440] sm:$0xff]  ;;  %v2238_v41 = vpack.c.bf16 %v1026_v40, %v1020_v27  ;;  %v1133_v40 = vld [vmem:[#allocation14 + $0xb30] sm:$0xff] }
 0x3fb   :  { %2167 = vmatprep.subr.bf16.mxu1 %v2166_v46  ;;  %v917_v46 = vld [vmem:[#allocation14 + $0x470] sm:$0xff]  ;;  %v1127_v27 = vld [vmem:[#allocation14 + $0xb00] sm:$0xff] }
 0x3fc   :  { %v2204_v49 = vpack.c.bf16 %v917_v46, %v911_v43 }
 0x3fe   :  { %2169 = vmatpush1.bf16.msra.mxu1 %v2168_v51  ;;  %v923_v51 = vld [vmem:[#allocation14 + $0x4a0] sm:$0xff] }
 0x3ff   :  { %2171 = vmatprep.subr.bf16.mxu1 %v2170_v53  ;;  %v929_v53 = vld [vmem:[#allocation14 + $0x4d0] sm:$0xff] }
 0x400   :  { %v2208_v55 = vpack.c.bf16 %v929_v53, %v923_v51  ;;  %v2244_v51 = vpack.c.bf16 %v1037_v48, %v1031_v47 }
 0x402   :  { %2173 = vmatpush1.bf16.msra.mxu1 %v2172_v57  ;;  %v935_v57 = vld [vmem:[#allocation14 + $0x500] sm:$0xff] }
 0x403   :  { %2175 = vmatprep.subr.bf16.mxu1 %v2174_v60  ;;  %v941_v60 = vld [vmem:[#allocation14 + $0x530] sm:$0xff] }
 0x404   :  { %v2212_v62 = vpack.c.bf16 %v941_v60, %v935_v57  ;;  %v2248_v57 = vpack.c.bf16 %v1049_v54, %v1043_v52 }
 0x406   :  { %2177 = vmatpush1.bf16.msra.mxu1 %v2176_v0  ;;  %v947_v0 = vld [vmem:[#allocation14 + $0x560] sm:$0xff] }
 0x407   :  { %2179 = vmatprep.subr.bf16.mxu1 %v2178_v1  ;;  %v953_v1 = vld [vmem:[#allocation14 + $0x590] sm:$0xff] }
 0x408   :  { %v2216_v4 = vpack.c.bf16 %v953_v1, %v947_v0  ;;  %v2252_v0 = vpack.c.bf16 %v1061_v61, %v1055_v10 }
 0x40a   :  { %2181 = vmatpush1.bf16.msra.mxu1 %v2180_v7  ;;  %v959_v7 = vld [vmem:[#allocation14 + $0x5c0] sm:$0xff] }
 0x40b   :  { %2183 = vmatprep.subr.bf16.mxu1 %v2182_v8  ;;  %v965_v8 = vld [vmem:[#allocation14 + $0x5f0] sm:$0xff] }
 0x40c   :  { %v2220_v12 = vpack.c.bf16 %v965_v8, %v959_v7  ;;  %v2256_v7 = vpack.c.bf16 %v1073_v3, %v1067_v2 }
 0x40e   :  { %2185 = vmatpush1.bf16.msra.mxu1 %v2184_v14  ;;  %v971_v14 = vld [vmem:[#allocation14 + $0x620] sm:$0xff] }
 0x40f   :  { %2187 = vmatprep.subr.bf16.mxu1 %v2186_v16  ;;  %v977_v16 = vld [vmem:[#allocation14 + $0x650] sm:$0xff] }
 0x410   :  { %v2224_v19 = vpack.c.bf16 %v977_v16, %v971_v14  ;;  %v2260_v14 = vpack.c.bf16 %v1085_v11, %v1079_v9 }
 0x412   :  { %2189 = vmatpush1.bf16.msra.mxu1 %v2188_v21  ;;  %v983_v21 = vld [vmem:[#allocation14 + $0x680] sm:$0xff] }
 0x413   :  { %2191 = vmatprep.subr.bf16.mxu1 %v2190_v22  ;;  %v989_v22 = vld [vmem:[#allocation14 + $0x6b0] sm:$0xff] }
 0x414   :  { %v2228_v26 = vpack.c.bf16 %v989_v22, %v983_v21  ;;  %v2264_v21 = vpack.c.bf16 %v1097_v18, %v1091_v17 }
 0x416   :  { %2193 = vmatpush1.bf16.msra.mxu1 %v2192_v33  ;;  %v995_v33 = vld [vmem:[#allocation14 + $0x6e0] sm:$0xff] }
 0x417   :  { %2195 = vmatprep.subr.bf16.mxu1 %v2194_v34  ;;  %v1001_v34 = vld [vmem:[#allocation14 + $0x710] sm:$0xff] }
 0x418   :  { %v2232_v37 = vpack.c.bf16 %v1001_v34, %v995_v33  ;;  %v2268_v33 = vpack.c.bf16 %v1109_v25, %v1103_v24 }
 0x41a   :  { %2197 = vmatpush1.bf16.msra.mxu1 %v2196_v38  ;;  %v1007_v38 = vld [vmem:[#allocation14 + $0x740] sm:$0xff] }
 0x41b   :  { %2199 = vmatprep.subr.bf16.mxu1 %v2198_v39  ;;  %v1013_v39 = vld [vmem:[#allocation14 + $0x770] sm:$0xff] }
 0x41e   :  { %2201 = vmatpush1.bf16.msra.mxu1 %v2200_v44  ;;  %v1032_v44 = vld [vmem:[#allocation14 + $0x808] sm:$0xff] }
 0x41f   :  { %2203 = vmatprep.subr.bf16.mxu1 %v2202_v45  ;;  %v1038_v45 = vld [vmem:[#allocation14 + $0x838] sm:$0xff] }
 0x420   :  { %v2242_v46 = vpack.c.bf16 %v1038_v45, %v1032_v44  ;;  %v1139_v44 = vld [vmem:[#allocation14 + $0xb60] sm:$0xff]  ;;  %v1145_v45 = vld [vmem:[#allocation14 + $0xb90] sm:$0xff] }
 0x421   :  { %v2280_v47 = vpack.c.bf16 %v1145_v45, %v1139_v44 }
 0x422   :  { %2205 = vmatpush1.bf16.msra.mxu1 %v2204_v49  ;;  %v1044_v49 = vld [vmem:[#allocation14 + $0x868] sm:$0xff] }
 0x423   :  { %2207 = vmatprep.subr.bf16.mxu1 %v2206_v50  ;;  %v1050_v50 = vld [vmem:[#allocation14 + $0x898] sm:$0xff] }
 0x424   :  { %v2246_v53 = vpack.c.bf16 %v1050_v50, %v1044_v49  ;;  %v1151_v49 = vld [vmem:[#allocation14 + $0xbc0] sm:$0xff]  ;;  %v1157_v50 = vld [vmem:[#allocation14 + $0xbf0] sm:$0xff] }
 0x426   :  { %2209 = vmatpush1.bf16.msra.mxu1 %v2208_v55  ;;  %v1056_v55 = vld [vmem:[#allocation14 + $0x8c8] sm:$0xff] }
 0x427   :  { %2211 = vmatprep.subr.bf16.mxu1 %v2210_v56  ;;  %v1062_v56 = vld [vmem:[#allocation14 + $0x8f8] sm:$0xff] }
 0x428   :  { %v2250_v60 = vpack.c.bf16 %v1062_v56, %v1056_v55 }
 0x42a   :  { %2213 = vmatpush1.bf16.msra.mxu1 %v2212_v62  ;;  %v1068_v62 = vld [vmem:[#allocation14 + $0x928] sm:$0xff] }
 0x42b   :  { %2215 = vmatprep.subr.bf16.mxu1 %v2214_v63  ;;  %v1074_v63 = vld [vmem:[#allocation14 + $0x958] sm:$0xff] }
 0x42c   :  { %v2254_v1 = vpack.c.bf16 %v1074_v63, %v1068_v62 }
 0x42e   :  { %2217 = vmatpush1.bf16.msra.mxu1 %v2216_v4  ;;  %v1080_v4 = vld [vmem:[#allocation14 + $0x988] sm:$0xff] }
 0x42f   :  { %2219 = vmatprep.subr.bf16.mxu1 %v2218_v6  ;;  %v1086_v6 = vld [vmem:[#allocation14 + $0x9b8] sm:$0xff] }
 0x430   :  { %v2258_v8 = vpack.c.bf16 %v1086_v6, %v1080_v4 }
 0x432   :  { %2221 = vmatpush1.bf16.msra.mxu1 %v2220_v12  ;;  %v1092_v12 = vld [vmem:[#allocation14 + $0x9e8] sm:$0xff] }
 0x433   :  { %2223 = vmatprep.subr.bf16.mxu1 %v2222_v13  ;;  %v1098_v13 = vld [vmem:[#allocation14 + $0xa18] sm:$0xff] }
 0x434   :  { %v2262_v16 = vpack.c.bf16 %v1098_v13, %v1092_v12 }
 0x435   :  { %1540 = vmatmul.mubr.f32.vlgmr.msra.gmra.mrb[6].mxu1 %v2757_v15  ;;  %v2236_v15 = vpack.c.bf16 %v1013_v39, %v1007_v38  ;;  %v2272_v38 = vpack.c.bf16 %v1121_v36, %v1115_v35 }
 0x436   :  { %2225 = vmatpush1.bf16.msra.mxu1 %v2224_v19  ;;  %1610 = vmatprep.mubr.f32.mxu1 %v2769_v58  ;;  %v1019_v58 = vld [vmem:[#allocation14 + $0x7a0] sm:$0xff]  ;;  %v1104_v19 = vld [vmem:[#allocation14 + $0xa48] sm:$0xff] }
 0x437   :  { %2227 = vmatprep.subr.bf16.mxu1 %v2226_v20  ;;  %v2240_v43 = vpack.c.bf16 %v1025_v42, %v1019_v58  ;;  %v1110_v20 = vld [vmem:[#allocation14 + $0xa78] sm:$0xff]  ;;  %v2276_v58 = vpack.c.bf16 %v1133_v40, %v1127_v27 }
 0x438   :  { %v2266_v22 = vpack.c.bf16 %v1110_v20, %v1104_v19 }
 0x43a   :  { %2229 = vmatpush1.bf16.msra.mxu1 %v2228_v26  ;;  %v1116_v26 = vld [vmem:[#allocation14 + $0xaa8] sm:$0xff] }
 0x43b   :  { %2231 = vmatprep.subr.bf16.mxu1 %v2230_v30  ;;  %v1122_v30 = vld [vmem:[#allocation14 + $0xad8] sm:$0xff] }
 0x43c   :  { %v2270_v34 = vpack.c.bf16 %v1122_v30, %v1116_v26 }
 0x43e   :  { %2233 = vmatpush1.bf16.msra.mxu1 %v2232_v37  ;;  %v1128_v37 = vld [vmem:[#allocation14 + $0xb08] sm:$0xff] }
 0x43f   :  { %2235 = vmatprep.subr.bf16.mxu1 %v2234_v59  ;;  %v1134_v59 = vld [vmem:[#allocation14 + $0xb38] sm:$0xff] }
 0x440   :  { %v2274_v39 = vpack.c.bf16 %v1134_v59, %v1128_v37 }
 0x442   :  { %2237 = vmatpush1.bf16.msra.mxu1 %v2236_v15  ;;  %v1140_v15 = vld [vmem:[#allocation14 + $0xb68] sm:$0xff] }
 0x443   :  { %2239 = vmatprep.subr.bf16.mxu1 %v2238_v41  ;;  %v1146_v41 = vld [vmem:[#allocation14 + $0xb98] sm:$0xff] }
 0x444   :  { %v2278_v42 = vpack.c.bf16 %v1146_v41, %v1140_v15 }
 0x446   :  { %2241 = vmatpush1.bf16.msra.mxu1 %v2240_v43  ;;  %v1152_v43 = vld [vmem:[#allocation14 + $0xbc8] sm:$0xff] }
 0x447   :  { %2243 = vmatprep.subr.bf16.mxu1 %v2242_v46  ;;  %v1158_v46 = vld [vmem:[#allocation14 + $0xbf8] sm:$0xff] }
 0x448   :  { %v2282_v48 = vpack.c.bf16 %v1158_v46, %v1152_v43 }
 0x44a   :  { %2245 = vmatpush1.bf16.msra.mxu1 %v2244_v51  ;;  %v2284_v51 = vpack.c.bf16 %v1157_v50, %v1151_v49 }
 0x44b   :  { %2247 = vmatprep.subr.bf16.mxu1 %v2246_v53  ;;  %v1159_v53 = vld [vmem:[#allocation16] sm:$0x3f] }
 0x44c   :  { %v1164_v52 = vrot.slane %v1159_v53, %v2733_v29  ;;  %v1172_v54 = vrot.slane %v1159_v53, %v619_v5  ;;  %v1168_v55 = vrot.slane %v1159_v53, %v2736_v31  ;;  %v1176_v56 = vrot.slane %v1159_v53, %v623_v23 }
 0x44d   :  { %v1179_v29 = vsub.s32 4, %v2730_v28  ;;  %v1183_v5 = vsub.s32 5, %v2730_v28 }
 0x44e   :  { %2249 = vmatpush1.bf16.msra.mxu1 %v2248_v57 }
 0x44f   :  { %2251 = vmatprep.subr.bf16.mxu1 %v2250_v60  ;;  %v1180_v31 = vrot.slane %v1159_v53, %v1179_v29 }
 0x452   :  { %2253 = vmatpush1.bf16.msra.mxu1 %v2252_v0 }
 0x453   :  { %2255 = vmatprep.subr.bf16.mxu1 %v2254_v1 }
 0x456   :  { %2257 = vmatpush1.bf16.msra.mxu1 %v2256_v7 }
 0x457   :  { %2259 = vmatprep.subr.bf16.mxu1 %v2258_v8 }
 0x45a   :  { %2261 = vmatpush1.bf16.msra.mxu1 %v2260_v14 }
 0x45b   :  { %2263 = vmatprep.subr.bf16.mxu1 %v2262_v16 }
 0x45e   :  { %2265 = vmatpush1.bf16.msra.mxu1 %v2264_v21 }
 0x45f   :  { %2267 = vmatprep.subr.bf16.mxu1 %v2266_v22 }
 0x462   :  { %2269 = vmatpush1.bf16.msra.mxu1 %v2268_v33 }
 0x463   :  { %2271 = vmatprep.subr.bf16.mxu1 %v2270_v34 }
 0x466   :  { %2273 = vmatpush1.bf16.msra.mxu1 %v2272_v38 }
 0x467   :  { %2275 = vmatprep.subr.bf16.mxu1 %v2274_v39 }
 0x46a   :  { %2277 = vmatpush1.bf16.msra.mxu1 %v2276_v58 }
 0x46b   :  { %2279 = vmatprep.subr.bf16.mxu1 %v2278_v42 }
 0x46e   :  { %2281 = vmatpush1.bf16.msra.mxu1 %v2280_v47 }
 0x46f   :  { %2283 = vmatprep.subr.bf16.mxu1 %v2282_v48 }
 0x472   :  { %2285 = vmatpush1.bf16.msra.mxu1 %v2284_v51 }
 0x475   :  { %1611 = vmatmul.mubr.f32.vlgmr.msra.gmra.mrb[6].mxu1 %v2778_v32  ;;  %v1184_v32 = vrot.slane %v1159_v53, %v1183_v5 }
 0x4c8   :  { %v1328_v57 = vpop.f32.mrb[4].mxu1  ;;  %v1470_v60 = vpop.f32.mrb[4].mxu0 }
 0x4c9   :  { %v2288_v10 = vadd.f32 %v1328_v57, %v1164_v52  ;;  %v2290_v61 = vadd.f32 %v1470_v60, %v1172_v54  ;;  %v1330_v62 = vpop.f32.mrb[5].mxu1  ;;  %v1472_v63 = vpop.f32.mrb[5].mxu0 }
 0x4ca   :  { %v2289_v0 = vadd.f32 %v1330_v62, %v1168_v55  ;;  %v2291_v1 = vadd.f32 %v1472_v63, %v1176_v56 }
 0x4cb   :  { %1617 = vst [vmem:[#allocation17] sm:$0xff] %v2288_v10  ;;  %1619 = vst [vmem:[#allocation17 + $0x10] sm:$0xff] %v2290_v61 }
 0x4cc   :  { %1618 = vst [vmem:[#allocation17 + $0x8] sm:$0xff] %v2289_v0  ;;  %1620 = vst [vmem:[#allocation17 + $0x18] sm:$0xff] %v2291_v1 }
 0x548   :  { %v1612_v23 = vpop.f32.mrb[6].mxu1 }
 0x549   :  { %v2292_v2 = vadd.f32 %v1612_v23, %v1180_v31  ;;  %v1614_v3 = vpop.f32.mrb[7].mxu1 }
 0x54a   :  { %v2293_v4 = vadd.f32 %v1614_v3, %v1184_v32 }
 0x54b   :  { %1621 = vst [vmem:[#allocation17 + $0x20] sm:$0xff] %v2292_v2 }
 0x54c   :  { %1622 = vst [vmem:[#allocation17 + $0x28] sm:$0xff] %v2293_v4 }
 0x54d   :  { %2530 = shalt.err (!%p2527_p6)
}
 0x54e   :  { %s2531_s22 = scalar_lea.hbm %s2815_s9, 768 }
 0x54f   :  { %p2532_p7 = scmp.ne.s32.totalorder %s2815_s9, %s2531_s22  ;;  %p2535_p8 = scmp.lt.u32.totalorder %s2531_s22, %s2815_s9 }
 0x551   :  { %p2537_p9 = pnand %p2535_p8, %p2532_p7 }
 0x553   :  { %2540 = shalt.err (!%p2537_p9)
}
 0x554   :  { %1632 = dma.vmem_to_hbm [thread:$0]  %s1630_s24, 768, %s2815_s9, [#allocation4]  }
 0x555   :  { %2551 = dma.done.wait [#allocation4], 768  }
 0x556   :  { %2552 = vsyncadd [#allocation4], 4294966528 }
 0x557   :  { %1636 = vsyncpa [#allocation3], 1 }
 0x558   :  { %1637 = vsyncpa [#allocation6], 1 }
 0x559   :  { %1638 = vsyncpa [#allocation9], 1 }
 0x55a   :  { %1639 = vsyncpa [#allocation12], 1 }
 0x55b   :  { %1640 = vsyncpa [#allocation15], 1 }
 0x55c   :  { %1641 = vsyncpa [#allocation4], 1 }

</bundles_post_ra>
